<compile_context>
chip_gen: v7x
topology: tpu7x:2x2x1
jax: 0.10.0
libtpu: 0.0.40
codegen_flags: <defaults>
</compile_context>

<pallas_src>
import jax
import jax.numpy as jnp
from jax.experimental import pallas as pl
from jax.experimental.pallas import tpu as pltpu

LANES = 128  # lane-dense padding for every channel dimension


def calc_conv2d_output(h_w, kernel_size=1, stride=1, pad=0, dilation=1):
    h = (h_w[0] + 2 * pad - dilation * (kernel_size - 1) - 1) // stride + 1
    w = (h_w[1] + 2 * pad - dilation * (kernel_size - 1) - 1) // stride + 1
    return (h, w)


# ---------------------------------------------------------------------------
# Fused Pallas kernel: conv1+ReLU -> conv2+ReLU -> conv3+ReLU, all in VMEM.
# ---------------------------------------------------------------------------
def _make_fused_kernel(H1, W1, H2, W2, H3, W3, c1, c2):
    Hs, Ws = H1 // 2, W1 // 2          # space-to-depth(2) grid feeding layer 2
    Q = Hs * Ws

    def kernel(p1_ref, w1_ref, b1_ref, w2_ref, b2_ref, w3_ref, b3_ref,
               out_ref, act1_s, a1_s, p2_s, a2_s, p3_s):
        # ---- layer 1: one full-M MXU matmul (bf16 x bf16 -> f32) ----------
        acc1 = jnp.dot(p1_ref[...], w1_ref[...],
                       preferred_element_type=jnp.float32)       # (H1*W1, 128)
        act1_s[...] = jnp.maximum(acc1 + b1_ref[...], 0.0)

        # Scatter layer-1 activations into a stride-removing space-to-depth
        # layout: rows = Hs x Ws coarse grid, lanes = (parity_h, parity_w, c1)
        # = 4*32 = 128 (fully lane-dense).  p1 rows were pre-ordered by output
        # parity in the wrapper, so this is 4 contiguous block copies.
        for p in range(4):
            a1_s[:, c1 * p:c1 * (p + 1)] = act1_s[Q * p:Q * (p + 1), 0:c1]

        # ---- layer 2: 4x4/s2 conv == 2x2/s1 conv on the STD grid ----------
        # im2col via 2*2*H2 contiguous (W2, 128) block copies.
        for di in range(2):
            for dj in range(2):
                c0 = (di * 2 + dj) * (4 * c1)
                for oh in range(H2):
                    src = (oh + di) * Ws + dj
                    p2_s[oh * W2:(oh + 1) * W2, c0:c0 + 4 * c1] = \
                        a1_s[src:src + W2, :]
        acc2 = jnp.dot(p2_s[...].astype(jnp.bfloat16), w2_ref[...],
                       preferred_element_type=jnp.float32)       # (H2*W2, 128)
        a2_s[...] = jnp.maximum(acc2 + b2_ref[...], 0.0)

        # ---- layer 3: 3x3/s1 conv, im2col via 3*3*H3 block copies ---------
        for i in range(3):
            for j in range(3):
                c0 = (i * 3 + j) * c2
                for oh in range(H3):
                    src = (oh + i) * W2 + j
                    p3_s[oh * W3:(oh + 1) * W3, c0:c0 + c2] = \
                        a2_s[src:src + W3, 0:c2]
        acc3 = jnp.dot(p3_s[...].astype(jnp.bfloat16), w3_ref[...],
                       preferred_element_type=jnp.float32)       # (H3*W3, 128)
        out_ref[...] = jnp.maximum(acc3 + b3_ref[...], 0.0).astype(out_ref.dtype)

    return kernel


# ---------------------------------------------------------------------------
# Wrapper-side glue (cheap XLA ops on tiny tensors).
# ---------------------------------------------------------------------------
def _space_to_depth4(x_nhwc, H1, W1):
    """(N,H,W,C) -> (N,H1+1,W1+1,16C): 8x8/s4 conv becomes 2x2/s1."""
    N, _, _, C = x_nhwc.shape
    x = x_nhwc[:, :4 * (H1 + 1), :4 * (W1 + 1), :]
    x = x.reshape(N, H1 + 1, 4, W1 + 1, 4, C)
    x = x.transpose(0, 1, 3, 2, 4, 5)
    return x.reshape(N, H1 + 1, W1 + 1, 16 * C)


def _layer1_patches(x_std, H1, W1):
    """2x2/s1 im2col; rows reordered by output parity for the in-kernel scatter."""
    N = x_std.shape[0]
    Cs = x_std.shape[-1]
    cols = [x_std[:, di:di + H1, dj:dj + W1, :]
            for di in (0, 1) for dj in (0, 1)]
    p = jnp.concatenate(cols, axis=-1)                    # (N, H1, W1, 4*Cs)
    p = p.reshape(N, H1 // 2, 2, W1 // 2, 2, 4 * Cs)
    p = p.transpose(0, 2, 4, 1, 3, 5)                     # (pa, pb, oh2, ow2)
    return p.reshape(N, H1 * W1, 4 * Cs)


def _w1_matrix(w1):
    O, Cin, KH, KW = w1.shape                   # (32, C, 8, 8)
    w = w1.transpose(2, 3, 1, 0)                # (kh, kw, c, o)
    w = w.reshape(2, 4, 2, 4, Cin, O)           # (di, hs, dj, ws, c, o)
    w = w.transpose(0, 2, 1, 3, 4, 5)           # (di, dj, hs, ws, c, o)
    w = w.reshape(KH * KW * Cin, O)
    return jnp.pad(w, ((0, 0), (0, LANES - O)))


def _w2_matrix(w2):
    O, Cin, KH, KW = w2.shape                   # (64, 32, 4, 4)
    w = w2.transpose(2, 3, 1, 0)                # (i, j, c, o)
    w = w.reshape(2, 2, 2, 2, Cin, O)           # (di, pa, dj, pb, c, o)
    w = w.transpose(0, 2, 1, 3, 4, 5)           # (di, dj, pa, pb, c, o)
    w = w.reshape(KH * KW * Cin, O)
    return jnp.pad(w, ((0, 0), (0, LANES - O)))


def _w3_matrix(w3):
    O, Cin, KH, KW = w3.shape                   # (64, 64, 3, 3)
    w = w3.transpose(2, 3, 1, 0).reshape(KH * KW * Cin, O)   # (i, j, c) order
    return jnp.pad(w, ((0, 0), (0, LANES - O)))


def _bias_row(b):
    return jnp.pad(b.astype(jnp.float32).reshape(1, -1),
                   ((0, 0), (0, LANES - b.shape[0])))


def nature_cnn_backbone(x_nchw, params):
    """Input (N, C, H, W) float32 -> (N, 64*h3*w3) features (torch Flatten order)."""
    (w1, b1), (w2, b2), (w3, b3) = params
    N, C, H, W = x_nchw.shape
    c1, c2, c3 = w1.shape[0], w2.shape[0], w3.shape[0]
    assert 4 * c1 == LANES and c2 <= LANES and c3 <= LANES

    H1, W1 = calc_conv2d_output((H, W), 8, 4)
    H2, W2 = calc_conv2d_output((H1, W1), 4, 2)
    H3, W3 = calc_conv2d_output((H2, W2), 3, 1)
    # TODO(synk): odd conv1 output sizes would need a non-parity layer-2 path.
    assert H1 % 2 == 0 and W1 % 2 == 0, "fused kernel assumes even conv1 output"

    # ---- cheap XLA prep: NHWC, space-to-depth(4), 4-slice im2col, bf16 ----
    x_nhwc = jnp.transpose(x_nchw, (0, 2, 3, 1)).astype(jnp.float32)
    x_std = _space_to_depth4(x_nhwc, H1, W1)
    p1 = _layer1_patches(x_std, H1, W1).astype(jnp.bfloat16)   # (N, H1*W1, 64C)

    K1 = p1.shape[-1]
    w1m = _w1_matrix(w1).astype(jnp.bfloat16)                  # (K1, 128)
    w2m = _w2_matrix(w2).astype(jnp.bfloat16)                  # (512, 128)
    w3m = _w3_matrix(w3).astype(jnp.bfloat16)                  # (576, 128)
    b1r, b2r, b3r = _bias_row(b1), _bias_row(b2), _bias_row(b3)
    K2, K3 = w2m.shape[0], w3m.shape[0]

    kernel = _make_fused_kernel(H1, W1, H2, W2, H3, W3, c1, c2)
    const = lambda n: (0, 0)

    out = pl.pallas_call(
        kernel,
        out_shape=jax.ShapeDtypeStruct((N, H3 * W3, LANES), jnp.float32),
        grid=(N,),
        in_specs=[
            pl.BlockSpec((None, H1 * W1, K1), lambda n: (n, 0, 0)),
            pl.BlockSpec((K1, LANES), const),
            pl.BlockSpec((1, LANES), const),
            pl.BlockSpec((K2, LANES), const),
            pl.BlockSpec((1, LANES), const),
            pl.BlockSpec((K3, LANES), const),
            pl.BlockSpec((1, LANES), const),
        ],
        out_specs=pl.BlockSpec((None, H3 * W3, LANES), lambda n: (n, 0, 0)),
        scratch_shapes=[
            pltpu.VMEM((H1 * W1, LANES), jnp.float32),            # act1 (parity order)
            pltpu.VMEM(((H1 // 2) * (W1 // 2), LANES), jnp.float32),  # act1 STD layout
            pltpu.VMEM((H2 * W2, K2), jnp.float32),               # layer-2 patches
            pltpu.VMEM((H2 * W2, LANES), jnp.float32),            # act2
            pltpu.VMEM((H3 * W3, K3), jnp.float32),               # layer-3 patches
        ],
        compiler_params=pltpu.CompilerParams(
            dimension_semantics=("parallel",),        # batch across v7x's 2 TCs
            vmem_limit_bytes=32 * 1024 * 1024),       # v7x-safe headroom cap
    )(p1, w1m, b1r, w2m, b2r, w3m, b3r)

    # (N, H3*W3, 128): drop lane padding, fold to torch NCHW-Flatten ordering.
    feats = out[:, :, :c3]                        # (N, H3*W3, 64)
    feats = jnp.transpose(feats, (0, 2, 1))       # (N, 64, H3*W3)  -- tiny
    return feats.reshape(N, c3 * H3 * W3)


# ---------------------------------------------------------------------------
# Parameters + pure-XLA reference (same bf16-input / f32-accumulate rounding).
# ---------------------------------------------------------------------------
def init_params(key, c_in):
    """Deterministic init mimicking PyTorch Conv2d defaults (U[-1/sqrt(fan_in), ..])."""
    layer_shapes = [
        ((32, c_in, 8, 8), (32,)),
        ((64, 32, 4, 4), (64,)),
        ((64, 64, 3, 3), (64,)),
    ]
    params = []
    for wshape, bshape in layer_shapes:
        key, kw_, kb_ = jax.random.split(key, 3)
        fan_in = wshape[1] * wshape[2] * wshape[3]
        bound = 1.0 / (fan_in ** 0.5)
        w = jax.random.uniform(kw_, wshape, jnp.float32, -bound, bound)
        b = jax.random.uniform(kb_, bshape, jnp.float32, -bound, bound)
        params.append((w, b))
    return params


def nature_cnn_reference(x_nchw, params):
    """lax.conv reference with matching bf16 operand quantization (f32 accumulate)."""
    def q(a):
        return a.astype(jnp.bfloat16).astype(jnp.float32)
    x = x_nchw.astype(jnp.float32)
    for (w, b), s in zip(params, (4, 2, 1)):
        y = jax.lax.conv_general_dilated(
            q(x), q(w), (s, s), "VALID",
            dimension_numbers=("NCHW", "OIHW", "NCHW"))
        x = jnp.maximum(y + b[None, :, None, None], 0.0)
    return x.reshape(x.shape[0], -1)


if __name__ == "__main__":
    # Small input consistent with the module: batch=2, channels=4, 44x44 frames
    # (8/4/3 conv stack -> 2x2 spatial output, out_features = 256).
    N, C, H, W = 2, 4, 44, 44
    key = jax.random.PRNGKey(0)
    k_x, k_p = jax.random.split(key)
    x = jax.random.normal(k_x, (N, C, H, W), dtype=jnp.float32)
    params = init_params(k_p, C)

    h, w = calc_conv2d_output((H, W), 8, 4)
    h, w = calc_conv2d_output((h, w), 4, 2)
    h, w = calc_conv2d_output((h, w), 3, 1)
    out_features = 64 * h * w   # matches self.out_features in the module

    out = jax.block_until_ready(jax.jit(nature_cnn_backbone)(x, params))
    assert out.shape == (N, out_features), (out.shape, (N, out_features))

    ref = jax.block_until_ready(nature_cnn_reference(x, params))
    max_err = float(jnp.max(jnp.abs(out - ref)))
    assert jnp.allclose(out, ref, atol=2e-3, rtol=2e-3), (
        f"mismatch vs XLA reference, max abs diff {max_err}")

    print("KERNEL_OK")
</pallas_src>

<mosaic_0001>
module attributes {stable_mosaic.version = 11 : i64} {
  func.func @kernel(%arg0: i32, %arg1: memref<1x100x256xbf16, #tpu.memory_space<vmem>>, %arg2: memref<256x128xbf16, #tpu.memory_space<vmem>>, %arg3: memref<1x128xf32, #tpu.memory_space<vmem>>, %arg4: memref<512x128xbf16, #tpu.memory_space<vmem>>, %arg5: memref<1x128xf32, #tpu.memory_space<vmem>>, %arg6: memref<576x128xbf16, #tpu.memory_space<vmem>>, %arg7: memref<1x128xf32, #tpu.memory_space<vmem>>, %arg8: memref<1x4x128xf32, #tpu.memory_space<vmem>>, %arg9: memref<100x128xf32, #tpu.memory_space<vmem>>, %arg10: memref<25x128xf32, #tpu.memory_space<vmem>>, %arg11: memref<16x512xf32, #tpu.memory_space<vmem>>, %arg12: memref<16x128xf32, #tpu.memory_space<vmem>>, %arg13: memref<4x576xf32, #tpu.memory_space<vmem>>) attributes {dimension_semantics = [#tpu.dimension_semantics<parallel>], iteration_bounds = array<i64: 2>, scalar_prefetch = 0 : i64, scratch_operands = 5 : i64, tpu.core_type = #tpu.core_type<tc>, window_params = [{transform_indices = @transform_0, window_bounds = array<i64: 1, 100, 256>}, {pipeline_mode = #tpu.pipeline_mode<synchronous>, transform_indices = @transform_1, window_bounds = array<i64: 256, 128>}, {pipeline_mode = #tpu.pipeline_mode<synchronous>, transform_indices = @transform_2, window_bounds = array<i64: 1, 128>}, {pipeline_mode = #tpu.pipeline_mode<synchronous>, transform_indices = @transform_3, window_bounds = array<i64: 512, 128>}, {pipeline_mode = #tpu.pipeline_mode<synchronous>, transform_indices = @transform_4, window_bounds = array<i64: 1, 128>}, {pipeline_mode = #tpu.pipeline_mode<synchronous>, transform_indices = @transform_5, window_bounds = array<i64: 576, 128>}, {pipeline_mode = #tpu.pipeline_mode<synchronous>, transform_indices = @transform_6, window_bounds = array<i64: 1, 128>}, {transform_indices = @transform_7, window_bounds = array<i64: 1, 4, 128>}]} {
    %c0 = arith.constant 0 : index
    %c0_0 = arith.constant 0 : index
    %c0_1 = arith.constant 0 : index
    %0 = vector.load %arg1[%c0, %c0_0, %c0_1] : memref<1x100x256xbf16, #tpu.memory_space<vmem>>, vector<1x100x256xbf16>
    %1 = vector.shape_cast %0 : vector<1x100x256xbf16> to vector<100x256xbf16>
    %c0_2 = arith.constant 0 : index
    %c0_3 = arith.constant 0 : index
    %2 = vector.load %arg2[%c0_2, %c0_3] : memref<256x128xbf16, #tpu.memory_space<vmem>>, vector<256x128xbf16>
    %cst = arith.constant dense<0.000000e+00> : vector<100x128xf32>
    %3 = tpu.matmul %1, %2, %cst {dimension_numbers = #tpu.dot_dimension_numbers<[1], [0], [0], [1], [0, 0, 1, 1], [], []>} : vector<100x256xbf16>, vector<256x128xbf16>, vector<100x128xf32> -> vector<100x128xf32>
    %c0_4 = arith.constant 0 : index
    %c0_5 = arith.constant 0 : index
    %4 = vector.load %arg3[%c0_4, %c0_5] : memref<1x128xf32, #tpu.memory_space<vmem>>, vector<1x128xf32>
    %5 = vector.broadcast %4 : vector<1x128xf32> to vector<100x128xf32>
    %6 = arith.addf %3, %5 : vector<100x128xf32>
    %cst_6 = arith.constant 0.000000e+00 : f32
    %7 = vector.broadcast %cst_6 : f32 to vector<100x128xf32>
    %8 = arith.maximumf %6, %7 : vector<100x128xf32>
    %c0_7 = arith.constant 0 : index
    %c0_8 = arith.constant 0 : index
    %9 = vector.load %arg9[%c0_7, %c0_8] : memref<100x128xf32, #tpu.memory_space<vmem>>, vector<100x128xf32>
    tpu.vector_store %arg9[%c0_7, %c0_8], %8 {strides = array<i32>} : memref<100x128xf32, #tpu.memory_space<vmem>>, vector<100x128xf32>,
    %c0_9 = arith.constant 0 : index
    %c0_10 = arith.constant 0 : index
    %10 = vector.load %arg9[%c0_9, %c0_10] : memref<100x128xf32, #tpu.memory_space<vmem>>, vector<25x32xf32>
    %c0_11 = arith.constant 0 : index
    %c0_12 = arith.constant 0 : index
    %11 = vector.load %arg10[%c0_11, %c0_12] : memref<25x128xf32, #tpu.memory_space<vmem>>, vector<25x32xf32>
    tpu.vector_store %arg10[%c0_11, %c0_12], %10 {strides = array<i32>} : memref<25x128xf32, #tpu.memory_space<vmem>>, vector<25x32xf32>,
    %c25 = arith.constant 25 : index
    %c0_13 = arith.constant 0 : index
    %12 = vector.load %arg9[%c25, %c0_13] : memref<100x128xf32, #tpu.memory_space<vmem>>, vector<25x32xf32>
    %c0_14 = arith.constant 0 : index
    %c32 = arith.constant 32 : index
    %13 = vector.load %arg10[%c0_14, %c32] : memref<25x128xf32, #tpu.memory_space<vmem>>, vector<25x32xf32>
    tpu.vector_store %arg10[%c0_14, %c32], %12 {strides = array<i32>} : memref<25x128xf32, #tpu.memory_space<vmem>>, vector<25x32xf32>,
    %c50 = arith.constant 50 : index
    %c0_15 = arith.constant 0 : index
    %14 = vector.load %arg9[%c50, %c0_15] : memref<100x128xf32, #tpu.memory_space<vmem>>, vector<25x32xf32>
    %c0_16 = arith.constant 0 : index
    %c64 = arith.constant 64 : index
    %15 = vector.load %arg10[%c0_16, %c64] : memref<25x128xf32, #tpu.memory_space<vmem>>, vector<25x32xf32>
    tpu.vector_store %arg10[%c0_16, %c64], %14 {strides = array<i32>} : memref<25x128xf32, #tpu.memory_space<vmem>>, vector<25x32xf32>,
    %c75 = arith.constant 75 : index
    %c0_17 = arith.constant 0 : index
    %16 = vector.load %arg9[%c75, %c0_17] : memref<100x128xf32, #tpu.memory_space<vmem>>, vector<25x32xf32>
    %c0_18 = arith.constant 0 : index
    %c96 = arith.constant 96 : index
    %17 = vector.load %arg10[%c0_18, %c96] : memref<25x128xf32, #tpu.memory_space<vmem>>, vector<25x32xf32>
    tpu.vector_store %arg10[%c0_18, %c96], %16 {strides = array<i32>} : memref<25x128xf32, #tpu.memory_space<vmem>>, vector<25x32xf32>,
    %c0_19 = arith.constant 0 : index
    %c0_20 = arith.constant 0 : index
    %18 = vector.load %arg10[%c0_19, %c0_20] : memref<25x128xf32, #tpu.memory_space<vmem>>, vector<4x128xf32>
    %c0_21 = arith.constant 0 : index
    %c0_22 = arith.constant 0 : index
    %19 = vector.load %arg11[%c0_21, %c0_22] : memref<16x512xf32, #tpu.memory_space<vmem>>, vector<4x128xf32>
    tpu.vector_store %arg11[%c0_21, %c0_22], %18 {strides = array<i32>} : memref<16x512xf32, #tpu.memory_space<vmem>>, vector<4x128xf32>,
    %c5 = arith.constant 5 : index
    %c0_23 = arith.constant 0 : index
    %20 = vector.load %arg10[%c5, %c0_23] : memref<25x128xf32, #tpu.memory_space<vmem>>, vector<4x128xf32>
    %c4 = arith.constant 4 : index
    %c0_24 = arith.constant 0 : index
    %21 = vector.load %arg11[%c4, %c0_24] : memref<16x512xf32, #tpu.memory_space<vmem>>, vector<4x128xf32>
    tpu.vector_store %arg11[%c4, %c0_24], %20 {strides = array<i32>} : memref<16x512xf32, #tpu.memory_space<vmem>>, vector<4x128xf32>,
    %c10 = arith.constant 10 : index
    %c0_25 = arith.constant 0 : index
    %22 = vector.load %arg10[%c10, %c0_25] : memref<25x128xf32, #tpu.memory_space<vmem>>, vector<4x128xf32>
    %c8 = arith.constant 8 : index
    %c0_26 = arith.constant 0 : index
    %23 = vector.load %arg11[%c8, %c0_26] : memref<16x512xf32, #tpu.memory_space<vmem>>, vector<4x128xf32>
    tpu.vector_store %arg11[%c8, %c0_26], %22 {strides = array<i32>} : memref<16x512xf32, #tpu.memory_space<vmem>>, vector<4x128xf32>,
    %c15 = arith.constant 15 : index
    %c0_27 = arith.constant 0 : index
    %24 = vector.load %arg10[%c15, %c0_27] : memref<25x128xf32, #tpu.memory_space<vmem>>, vector<4x128xf32>
    %c12 = arith.constant 12 : index
    %c0_28 = arith.constant 0 : index
    %25 = vector.load %arg11[%c12, %c0_28] : memref<16x512xf32, #tpu.memory_space<vmem>>, vector<4x128xf32>
    tpu.vector_store %arg11[%c12, %c0_28], %24 {strides = array<i32>} : memref<16x512xf32, #tpu.memory_space<vmem>>, vector<4x128xf32>,
    %c1 = arith.constant 1 : index
    %c0_29 = arith.constant 0 : index
    %26 = vector.load %arg10[%c1, %c0_29] : memref<25x128xf32, #tpu.memory_space<vmem>>, vector<4x128xf32>
    %c0_30 = arith.constant 0 : index
    %c128 = arith.constant 128 : index
    %27 = vector.load %arg11[%c0_30, %c128] : memref<16x512xf32, #tpu.memory_space<vmem>>, vector<4x128xf32>
    tpu.vector_store %arg11[%c0_30, %c128], %26 {strides = array<i32>} : memref<16x512xf32, #tpu.memory_space<vmem>>, vector<4x128xf32>,
    %c6 = arith.constant 6 : index
    %c0_31 = arith.constant 0 : index
    %28 = vector.load %arg10[%c6, %c0_31] : memref<25x128xf32, #tpu.memory_space<vmem>>, vector<4x128xf32>
    %c4_32 = arith.constant 4 : index
    %c128_33 = arith.constant 128 : index
    %29 = vector.load %arg11[%c4_32, %c128_33] : memref<16x512xf32, #tpu.memory_space<vmem>>, vector<4x128xf32>
    tpu.vector_store %arg11[%c4_32, %c128_33], %28 {strides = array<i32>} : memref<16x512xf32, #tpu.memory_space<vmem>>, vector<4x128xf32>,
    %c11 = arith.constant 11 : index
    %c0_34 = arith.constant 0 : index
    %30 = vector.load %arg10[%c11, %c0_34] : memref<25x128xf32, #tpu.memory_space<vmem>>, vector<4x128xf32>
    %c8_35 = arith.constant 8 : index
    %c128_36 = arith.constant 128 : index
    %31 = vector.load %arg11[%c8_35, %c128_36] : memref<16x512xf32, #tpu.memory_space<vmem>>, vector<4x128xf32>
    tpu.vector_store %arg11[%c8_35, %c128_36], %30 {strides = array<i32>} : memref<16x512xf32, #tpu.memory_space<vmem>>, vector<4x128xf32>,
    %c16 = arith.constant 16 : index
    %c0_37 = arith.constant 0 : index
    %32 = vector.load %arg10[%c16, %c0_37] : memref<25x128xf32, #tpu.memory_space<vmem>>, vector<4x128xf32>
    %c12_38 = arith.constant 12 : index
    %c128_39 = arith.constant 128 : index
    %33 = vector.load %arg11[%c12_38, %c128_39] : memref<16x512xf32, #tpu.memory_space<vmem>>, vector<4x128xf32>
    tpu.vector_store %arg11[%c12_38, %c128_39], %32 {strides = array<i32>} : memref<16x512xf32, #tpu.memory_space<vmem>>, vector<4x128xf32>,
    %c5_40 = arith.constant 5 : index
    %c0_41 = arith.constant 0 : index
    %34 = vector.load %arg10[%c5_40, %c0_41] : memref<25x128xf32, #tpu.memory_space<vmem>>, vector<4x128xf32>
    %c0_42 = arith.constant 0 : index
    %c256 = arith.constant 256 : index
    %35 = vector.load %arg11[%c0_42, %c256] : memref<16x512xf32, #tpu.memory_space<vmem>>, vector<4x128xf32>
    tpu.vector_store %arg11[%c0_42, %c256], %34 {strides = array<i32>} : memref<16x512xf32, #tpu.memory_space<vmem>>, vector<4x128xf32>,
    %c10_43 = arith.constant 10 : index
    %c0_44 = arith.constant 0 : index
    %36 = vector.load %arg10[%c10_43, %c0_44] : memref<25x128xf32, #tpu.memory_space<vmem>>, vector<4x128xf32>
    %c4_45 = arith.constant 4 : index
    %c256_46 = arith.constant 256 : index
    %37 = vector.load %arg11[%c4_45, %c256_46] : memref<16x512xf32, #tpu.memory_space<vmem>>, vector<4x128xf32>
    tpu.vector_store %arg11[%c4_45, %c256_46], %36 {strides = array<i32>} : memref<16x512xf32, #tpu.memory_space<vmem>>, vector<4x128xf32>,
    %c15_47 = arith.constant 15 : index
    %c0_48 = arith.constant 0 : index
    %38 = vector.load %arg10[%c15_47, %c0_48] : memref<25x128xf32, #tpu.memory_space<vmem>>, vector<4x128xf32>
    %c8_49 = arith.constant 8 : index
    %c256_50 = arith.constant 256 : index
    %39 = vector.load %arg11[%c8_49, %c256_50] : memref<16x512xf32, #tpu.memory_space<vmem>>, vector<4x128xf32>
    tpu.vector_store %arg11[%c8_49, %c256_50], %38 {strides = array<i32>} : memref<16x512xf32, #tpu.memory_space<vmem>>, vector<4x128xf32>,
    %c20 = arith.constant 20 : index
    %c0_51 = arith.constant 0 : index
    %40 = vector.load %arg10[%c20, %c0_51] : memref<25x128xf32, #tpu.memory_space<vmem>>, vector<4x128xf32>
    %c12_52 = arith.constant 12 : index
    %c256_53 = arith.constant 256 : index
    %41 = vector.load %arg11[%c12_52, %c256_53] : memref<16x512xf32, #tpu.memory_space<vmem>>, vector<4x128xf32>
    tpu.vector_store %arg11[%c12_52, %c256_53], %40 {strides = array<i32>} : memref<16x512xf32, #tpu.memory_space<vmem>>, vector<4x128xf32>,
    %c6_54 = arith.constant 6 : index
    %c0_55 = arith.constant 0 : index
    %42 = vector.load %arg10[%c6_54, %c0_55] : memref<25x128xf32, #tpu.memory_space<vmem>>, vector<4x128xf32>
    %c0_56 = arith.constant 0 : index
    %c384 = arith.constant 384 : index
    %43 = vector.load %arg11[%c0_56, %c384] : memref<16x512xf32, #tpu.memory_space<vmem>>, vector<4x128xf32>
    tpu.vector_store %arg11[%c0_56, %c384], %42 {strides = array<i32>} : memref<16x512xf32, #tpu.memory_space<vmem>>, vector<4x128xf32>,
    %c11_57 = arith.constant 11 : index
    %c0_58 = arith.constant 0 : index
    %44 = vector.load %arg10[%c11_57, %c0_58] : memref<25x128xf32, #tpu.memory_space<vmem>>, vector<4x128xf32>
    %c4_59 = arith.constant 4 : index
    %c384_60 = arith.constant 384 : index
    %45 = vector.load %arg11[%c4_59, %c384_60] : memref<16x512xf32, #tpu.memory_space<vmem>>, vector<4x128xf32>
    tpu.vector_store %arg11[%c4_59, %c384_60], %44 {strides = array<i32>} : memref<16x512xf32, #tpu.memory_space<vmem>>, vector<4x128xf32>,
    %c16_61 = arith.constant 16 : index
    %c0_62 = arith.constant 0 : index
    %46 = vector.load %arg10[%c16_61, %c0_62] : memref<25x128xf32, #tpu.memory_space<vmem>>, vector<4x128xf32>
    %c8_63 = arith.constant 8 : index
    %c384_64 = arith.constant 384 : index
    %47 = vector.load %arg11[%c8_63, %c384_64] : memref<16x512xf32, #tpu.memory_space<vmem>>, vector<4x128xf32>
    tpu.vector_store %arg11[%c8_63, %c384_64], %46 {strides = array<i32>} : memref<16x512xf32, #tpu.memory_space<vmem>>, vector<4x128xf32>,
    %c21 = arith.constant 21 : index
    %c0_65 = arith.constant 0 : index
    %48 = vector.load %arg10[%c21, %c0_65] : memref<25x128xf32, #tpu.memory_space<vmem>>, vector<4x128xf32>
    %c12_66 = arith.constant 12 : index
    %c384_67 = arith.constant 384 : index
    %49 = vector.load %arg11[%c12_66, %c384_67] : memref<16x512xf32, #tpu.memory_space<vmem>>, vector<4x128xf32>
    tpu.vector_store %arg11[%c12_66, %c384_67], %48 {strides = array<i32>} : memref<16x512xf32, #tpu.memory_space<vmem>>, vector<4x128xf32>,
    %c0_68 = arith.constant 0 : index
    %c0_69 = arith.constant 0 : index
    %50 = vector.load %arg11[%c0_68, %c0_69] : memref<16x512xf32, #tpu.memory_space<vmem>>, vector<16x512xf32>
    %51 = arith.truncf %50 : vector<16x512xf32> to vector<16x512xbf16>
    %c0_70 = arith.constant 0 : index
    %c0_71 = arith.constant 0 : index
    %52 = vector.load %arg4[%c0_70, %c0_71] : memref<512x128xbf16, #tpu.memory_space<vmem>>, vector<512x128xbf16>
    %cst_72 = arith.constant dense<0.000000e+00> : vector<16x128xf32>
    %53 = tpu.matmul %51, %52, %cst_72 {dimension_numbers = #tpu.dot_dimension_numbers<[1], [0], [0], [1], [0, 0, 1, 1], [], []>} : vector<16x512xbf16>, vector<512x128xbf16>, vector<16x128xf32> -> vector<16x128xf32>
    %c0_73 = arith.constant 0 : index
    %c0_74 = arith.constant 0 : index
    %54 = vector.load %arg5[%c0_73, %c0_74] : memref<1x128xf32, #tpu.memory_space<vmem>>, vector<1x128xf32>
    %55 = vector.broadcast %54 : vector<1x128xf32> to vector<16x128xf32>
    %56 = arith.addf %53, %55 : vector<16x128xf32>
    %cst_75 = arith.constant 0.000000e+00 : f32
    %57 = vector.broadcast %cst_75 : f32 to vector<16x128xf32>
    %58 = arith.maximumf %56, %57 : vector<16x128xf32>
    %c0_76 = arith.constant 0 : index
    %c0_77 = arith.constant 0 : index
    %59 = vector.load %arg12[%c0_76, %c0_77] : memref<16x128xf32, #tpu.memory_space<vmem>>, vector<16x128xf32>
    tpu.vector_store %arg12[%c0_76, %c0_77], %58 {strides = array<i32>} : memref<16x128xf32, #tpu.memory_space<vmem>>, vector<16x128xf32>,
    %c0_78 = arith.constant 0 : index
    %c0_79 = arith.constant 0 : index
    %60 = vector.load %arg12[%c0_78, %c0_79] : memref<16x128xf32, #tpu.memory_space<vmem>>, vector<2x64xf32>
    %c0_80 = arith.constant 0 : index
    %c0_81 = arith.constant 0 : index
    %61 = vector.load %arg13[%c0_80, %c0_81] : memref<4x576xf32, #tpu.memory_space<vmem>>, vector<2x64xf32>
    tpu.vector_store %arg13[%c0_80, %c0_81], %60 {strides = array<i32>} : memref<4x576xf32, #tpu.memory_space<vmem>>, vector<2x64xf32>,
    %c4_82 = arith.constant 4 : index
    %c0_83 = arith.constant 0 : index
    %62 = vector.load %arg12[%c4_82, %c0_83] : memref<16x128xf32, #tpu.memory_space<vmem>>, vector<2x64xf32>
    %c2 = arith.constant 2 : index
    %c0_84 = arith.constant 0 : index
    %63 = vector.load %arg13[%c2, %c0_84] : memref<4x576xf32, #tpu.memory_space<vmem>>, vector<2x64xf32>
    tpu.vector_store %arg13[%c2, %c0_84], %62 {strides = array<i32>} : memref<4x576xf32, #tpu.memory_space<vmem>>, vector<2x64xf32>,
    %c1_85 = arith.constant 1 : index
    %c0_86 = arith.constant 0 : index
    %64 = vector.load %arg12[%c1_85, %c0_86] : memref<16x128xf32, #tpu.memory_space<vmem>>, vector<2x64xf32>
    %c0_87 = arith.constant 0 : index
    %c64_88 = arith.constant 64 : index
    %65 = vector.load %arg13[%c0_87, %c64_88] : memref<4x576xf32, #tpu.memory_space<vmem>>, vector<2x64xf32>
    tpu.vector_store %arg13[%c0_87, %c64_88], %64 {strides = array<i32>} : memref<4x576xf32, #tpu.memory_space<vmem>>, vector<2x64xf32>,
    %c5_89 = arith.constant 5 : index
    %c0_90 = arith.constant 0 : index
    %66 = vector.load %arg12[%c5_89, %c0_90] : memref<16x128xf32, #tpu.memory_space<vmem>>, vector<2x64xf32>
    %c2_91 = arith.constant 2 : index
    %c64_92 = arith.constant 64 : index
    %67 = vector.load %arg13[%c2_91, %c64_92] : memref<4x576xf32, #tpu.memory_space<vmem>>, vector<2x64xf32>
    tpu.vector_store %arg13[%c2_91, %c64_92], %66 {strides = array<i32>} : memref<4x576xf32, #tpu.memory_space<vmem>>, vector<2x64xf32>,
    %c2_93 = arith.constant 2 : index
    %c0_94 = arith.constant 0 : index
    %68 = vector.load %arg12[%c2_93, %c0_94] : memref<16x128xf32, #tpu.memory_space<vmem>>, vector<2x64xf32>
    %c0_95 = arith.constant 0 : index
    %c128_96 = arith.constant 128 : index
    %69 = vector.load %arg13[%c0_95, %c128_96] : memref<4x576xf32, #tpu.memory_space<vmem>>, vector<2x64xf32>
    tpu.vector_store %arg13[%c0_95, %c128_96], %68 {strides = array<i32>} : memref<4x576xf32, #tpu.memory_space<vmem>>, vector<2x64xf32>,
    %c6_97 = arith.constant 6 : index
    %c0_98 = arith.constant 0 : index
    %70 = vector.load %arg12[%c6_97, %c0_98] : memref<16x128xf32, #tpu.memory_space<vmem>>, vector<2x64xf32>
    %c2_99 = arith.constant 2 : index
    %c128_100 = arith.constant 128 : index
    %71 = vector.load %arg13[%c2_99, %c128_100] : memref<4x576xf32, #tpu.memory_space<vmem>>, vector<2x64xf32>
    tpu.vector_store %arg13[%c2_99, %c128_100], %70 {strides = array<i32>} : memref<4x576xf32, #tpu.memory_space<vmem>>, vector<2x64xf32>,
    %c4_101 = arith.constant 4 : index
    %c0_102 = arith.constant 0 : index
    %72 = vector.load %arg12[%c4_101, %c0_102] : memref<16x128xf32, #tpu.memory_space<vmem>>, vector<2x64xf32>
    %c0_103 = arith.constant 0 : index
    %c192 = arith.constant 192 : index
    %73 = vector.load %arg13[%c0_103, %c192] : memref<4x576xf32, #tpu.memory_space<vmem>>, vector<2x64xf32>
    tpu.vector_store %arg13[%c0_103, %c192], %72 {strides = array<i32>} : memref<4x576xf32, #tpu.memory_space<vmem>>, vector<2x64xf32>,
    %c8_104 = arith.constant 8 : index
    %c0_105 = arith.constant 0 : index
    %74 = vector.load %arg12[%c8_104, %c0_105] : memref<16x128xf32, #tpu.memory_space<vmem>>, vector<2x64xf32>
    %c2_106 = arith.constant 2 : index
    %c192_107 = arith.constant 192 : index
    %75 = vector.load %arg13[%c2_106, %c192_107] : memref<4x576xf32, #tpu.memory_space<vmem>>, vector<2x64xf32>
    tpu.vector_store %arg13[%c2_106, %c192_107], %74 {strides = array<i32>} : memref<4x576xf32, #tpu.memory_space<vmem>>, vector<2x64xf32>,
    %c5_108 = arith.constant 5 : index
    %c0_109 = arith.constant 0 : index
    %76 = vector.load %arg12[%c5_108, %c0_109] : memref<16x128xf32, #tpu.memory_space<vmem>>, vector<2x64xf32>
    %c0_110 = arith.constant 0 : index
    %c256_111 = arith.constant 256 : index
    %77 = vector.load %arg13[%c0_110, %c256_111] : memref<4x576xf32, #tpu.memory_space<vmem>>, vector<2x64xf32>
    tpu.vector_store %arg13[%c0_110, %c256_111], %76 {strides = array<i32>} : memref<4x576xf32, #tpu.memory_space<vmem>>, vector<2x64xf32>,
    %c9 = arith.constant 9 : index
    %c0_112 = arith.constant 0 : index
    %78 = vector.load %arg12[%c9, %c0_112] : memref<16x128xf32, #tpu.memory_space<vmem>>, vector<2x64xf32>
    %c2_113 = arith.constant 2 : index
    %c256_114 = arith.constant 256 : index
    %79 = vector.load %arg13[%c2_113, %c256_114] : memref<4x576xf32, #tpu.memory_space<vmem>>, vector<2x64xf32>
    tpu.vector_store %arg13[%c2_113, %c256_114], %78 {strides = array<i32>} : memref<4x576xf32, #tpu.memory_space<vmem>>, vector<2x64xf32>,
    %c6_115 = arith.constant 6 : index
    %c0_116 = arith.constant 0 : index
    %80 = vector.load %arg12[%c6_115, %c0_116] : memref<16x128xf32, #tpu.memory_space<vmem>>, vector<2x64xf32>
    %c0_117 = arith.constant 0 : index
    %c320 = arith.constant 320 : index
    %81 = vector.load %arg13[%c0_117, %c320] : memref<4x576xf32, #tpu.memory_space<vmem>>, vector<2x64xf32>
    tpu.vector_store %arg13[%c0_117, %c320], %80 {strides = array<i32>} : memref<4x576xf32, #tpu.memory_space<vmem>>, vector<2x64xf32>,
    %c10_118 = arith.constant 10 : index
    %c0_119 = arith.constant 0 : index
    %82 = vector.load %arg12[%c10_118, %c0_119] : memref<16x128xf32, #tpu.memory_space<vmem>>, vector<2x64xf32>
    %c2_120 = arith.constant 2 : index
    %c320_121 = arith.constant 320 : index
    %83 = vector.load %arg13[%c2_120, %c320_121] : memref<4x576xf32, #tpu.memory_space<vmem>>, vector<2x64xf32>
    tpu.vector_store %arg13[%c2_120, %c320_121], %82 {strides = array<i32>} : memref<4x576xf32, #tpu.memory_space<vmem>>, vector<2x64xf32>,
    %c8_122 = arith.constant 8 : index
    %c0_123 = arith.constant 0 : index
    %84 = vector.load %arg12[%c8_122, %c0_123] : memref<16x128xf32, #tpu.memory_space<vmem>>, vector<2x64xf32>
    %c0_124 = arith.constant 0 : index
    %c384_125 = arith.constant 384 : index
    %85 = vector.load %arg13[%c0_124, %c384_125] : memref<4x576xf32, #tpu.memory_space<vmem>>, vector<2x64xf32>
    tpu.vector_store %arg13[%c0_124, %c384_125], %84 {strides = array<i32>} : memref<4x576xf32, #tpu.memory_space<vmem>>, vector<2x64xf32>,
    %c12_126 = arith.constant 12 : index
    %c0_127 = arith.constant 0 : index
    %86 = vector.load %arg12[%c12_126, %c0_127] : memref<16x128xf32, #tpu.memory_space<vmem>>, vector<2x64xf32>
    %c2_128 = arith.constant 2 : index
    %c384_129 = arith.constant 384 : index
    %87 = vector.load %arg13[%c2_128, %c384_129] : memref<4x576xf32, #tpu.memory_space<vmem>>, vector<2x64xf32>
    tpu.vector_store %arg13[%c2_128, %c384_129], %86 {strides = array<i32>} : memref<4x576xf32, #tpu.memory_space<vmem>>, vector<2x64xf32>,
    %c9_130 = arith.constant 9 : index
    %c0_131 = arith.constant 0 : index
    %88 = vector.load %arg12[%c9_130, %c0_131] : memref<16x128xf32, #tpu.memory_space<vmem>>, vector<2x64xf32>
    %c0_132 = arith.constant 0 : index
    %c448 = arith.constant 448 : index
    %89 = vector.load %arg13[%c0_132, %c448] : memref<4x576xf32, #tpu.memory_space<vmem>>, vector<2x64xf32>
    tpu.vector_store %arg13[%c0_132, %c448], %88 {strides = array<i32>} : memref<4x576xf32, #tpu.memory_space<vmem>>, vector<2x64xf32>,
    %c13 = arith.constant 13 : index
    %c0_133 = arith.constant 0 : index
    %90 = vector.load %arg12[%c13, %c0_133] : memref<16x128xf32, #tpu.memory_space<vmem>>, vector<2x64xf32>
    %c2_134 = arith.constant 2 : index
    %c448_135 = arith.constant 448 : index
    %91 = vector.load %arg13[%c2_134, %c448_135] : memref<4x576xf32, #tpu.memory_space<vmem>>, vector<2x64xf32>
    tpu.vector_store %arg13[%c2_134, %c448_135], %90 {strides = array<i32>} : memref<4x576xf32, #tpu.memory_space<vmem>>, vector<2x64xf32>,
    %c10_136 = arith.constant 10 : index
    %c0_137 = arith.constant 0 : index
    %92 = vector.load %arg12[%c10_136, %c0_137] : memref<16x128xf32, #tpu.memory_space<vmem>>, vector<2x64xf32>
    %c0_138 = arith.constant 0 : index
    %c512 = arith.constant 512 : index
    %93 = vector.load %arg13[%c0_138, %c512] : memref<4x576xf32, #tpu.memory_space<vmem>>, vector<2x64xf32>
    tpu.vector_store %arg13[%c0_138, %c512], %92 {strides = array<i32>} : memref<4x576xf32, #tpu.memory_space<vmem>>, vector<2x64xf32>,
    %c14 = arith.constant 14 : index
    %c0_139 = arith.constant 0 : index
    %94 = vector.load %arg12[%c14, %c0_139] : memref<16x128xf32, #tpu.memory_space<vmem>>, vector<2x64xf32>
    %c2_140 = arith.constant 2 : index
    %c512_141 = arith.constant 512 : index
    %95 = vector.load %arg13[%c2_140, %c512_141] : memref<4x576xf32, #tpu.memory_space<vmem>>, vector<2x64xf32>
    tpu.vector_store %arg13[%c2_140, %c512_141], %94 {strides = array<i32>} : memref<4x576xf32, #tpu.memory_space<vmem>>, vector<2x64xf32>,
    %c0_142 = arith.constant 0 : index
    %c0_143 = arith.constant 0 : index
    %96 = vector.load %arg13[%c0_142, %c0_143] : memref<4x576xf32, #tpu.memory_space<vmem>>, vector<4x576xf32>
    %97 = arith.truncf %96 : vector<4x576xf32> to vector<4x576xbf16>
    %c0_144 = arith.constant 0 : index
    %c0_145 = arith.constant 0 : index
    %98 = vector.load %arg6[%c0_144, %c0_145] : memref<576x128xbf16, #tpu.memory_space<vmem>>, vector<576x128xbf16>
    %cst_146 = arith.constant dense<0.000000e+00> : vector<4x128xf32>
    %99 = tpu.matmul %97, %98, %cst_146 {dimension_numbers = #tpu.dot_dimension_numbers<[1], [0], [0], [1], [0, 0, 1, 1], [], []>} : vector<4x576xbf16>, vector<576x128xbf16>, vector<4x128xf32> -> vector<4x128xf32>
    %c0_147 = arith.constant 0 : index
    %c0_148 = arith.constant 0 : index
    %100 = vector.load %arg7[%c0_147, %c0_148] : memref<1x128xf32, #tpu.memory_space<vmem>>, vector<1x128xf32>
    %101 = vector.broadcast %100 : vector<1x128xf32> to vector<4x128xf32>
    %102 = arith.addf %99, %101 : vector<4x128xf32>
    %cst_149 = arith.constant 0.000000e+00 : f32
    %103 = vector.broadcast %cst_149 : f32 to vector<4x128xf32>
    %104 = arith.maximumf %102, %103 : vector<4x128xf32>
    %c0_150 = arith.constant 0 : index
    %c0_151 = arith.constant 0 : index
    %c0_152 = arith.constant 0 : index
    %105 = vector.load %arg8[%c0_150, %c0_151, %c0_152] : memref<1x4x128xf32, #tpu.memory_space<vmem>>, vector<1x4x128xf32>
    %106 = vector.shape_cast %105 : vector<1x4x128xf32> to vector<4x128xf32>
    %107 = vector.shape_cast %104 : vector<4x128xf32> to vector<1x4x128xf32>
    tpu.vector_store %arg8[%c0_150, %c0_151, %c0_152], %107 {strides = array<i32>} : memref<1x4x128xf32, #tpu.memory_space<vmem>>, vector<1x4x128xf32>,
    return
  }
  func.func @transform_0(%arg0: i32) -> (i32, i32, i32) {
    %c0_i32 = arith.constant 0 : i32
    %c0_i32_0 = arith.constant 0 : i32
    %c0_i32_1 = arith.constant 0 : i32
    return %arg0, %c0_i32, %c0_i32_0 : i32, i32, i32
  }
  func.func @transform_1(%arg0: i32) -> (i32, i32) {
    %c0_i32 = arith.constant 0 : i32
    %c0_i32_0 = arith.constant 0 : i32
    %c0_i32_1 = arith.constant 0 : i32
    return %c0_i32, %c0_i32_0 : i32, i32
  }
  func.func @transform_2(%arg0: i32) -> (i32, i32) {
    %c0_i32 = arith.constant 0 : i32
    %c0_i32_0 = arith.constant 0 : i32
    %c0_i32_1 = arith.constant 0 : i32
    return %c0_i32, %c0_i32_0 : i32, i32
  }
  func.func @transform_3(%arg0: i32) -> (i32, i32) {
    %c0_i32 = arith.constant 0 : i32
    %c0_i32_0 = arith.constant 0 : i32
    %c0_i32_1 = arith.constant 0 : i32
    return %c0_i32, %c0_i32_0 : i32, i32
  }
  func.func @transform_4(%arg0: i32) -> (i32, i32) {
    %c0_i32 = arith.constant 0 : i32
    %c0_i32_0 = arith.constant 0 : i32
    %c0_i32_1 = arith.constant 0 : i32
    return %c0_i32, %c0_i32_0 : i32, i32
  }
  func.func @transform_5(%arg0: i32) -> (i32, i32) {
    %c0_i32 = arith.constant 0 : i32
    %c0_i32_0 = arith.constant 0 : i32
    %c0_i32_1 = arith.constant 0 : i32
    return %c0_i32, %c0_i32_0 : i32, i32
  }
  func.func @transform_6(%arg0: i32) -> (i32, i32) {
    %c0_i32 = arith.constant 0 : i32
    %c0_i32_0 = arith.constant 0 : i32
    %c0_i32_1 = arith.constant 0 : i32
    return %c0_i32, %c0_i32_0 : i32, i32
  }
  func.func @transform_7(%arg0: i32) -> (i32, i32, i32) {
    %c0_i32 = arith.constant 0 : i32
    %c0_i32_0 = arith.constant 0 : i32
    %c0_i32_1 = arith.constant 0 : i32
    return %arg0, %c0_i32, %c0_i32_0 : i32, i32, i32
  }
}

</mosaic_0001>

<bundles_post_ra>
// kernel: nature_cnn_backbone.1
= control target key start
LH: loop header
LB: loop body
LE: loop exit
PB: predicated region body
PF: predicated region fallthrough
CT: control target
= control target key end

     0   :  { %s2138_s24 = smov 0   ;;  %s2484_s0 = inlined_call_operand.vmem [shape: bf16[2,100,256], index: 0, kind: input, shape index: {}]   ;;  %s2485_s1 = inlined_call_operand.vmem [shape: bf16[256,128], index: 1, kind: input, shape index: {}]   ;;  %s2486_s2 = inlined_call_operand.vmem [shape: f32[1,128], index: 2, kind: input, shape index: {}]   ;;  %s2487_s3 = inlined_call_operand.vmem [shape: bf16[512,128], index: 3, kind: input, shape index: {}]   ;;  %s2488_s4 = inlined_call_operand.vmem [shape: f32[1,128], index: 4, kind: input, shape index: {}]   ;;  %s2489_s5 = inlined_call_operand.vmem [shape: bf16[576,128], index: 5, kind: input, shape index: {}]   ;;  %s2490_s6 = inlined_call_operand.vmem [shape: f32[1,128], index: 6, kind: input, shape index: {}]   ;;  %s2491_s7 = inlined_call_operand.vmem [shape: f32[2,4,128], index: 7, kind: output, shape index: {}]  }
   0x1 LB: > { %s1691_s25 = sadd.s32 4294967295, %s2091_s24   ;;  %p1695_p0 = scmp.ge.s32.totalorder %s2091_s24, 1  ;;  %s2091_s24 = sphi %s2138_s24, %s17_s24  }
   0x2   : > { %p237_p1 = scmp.lt.s32.totalorder %s2091_s24, 3 }
   0x4   : > { %p238_p2 = pnand %p1695_p0, %p237_p1 }
   0x5   : > { %v1979_v0 = vld [vmem:[%s2485_s1 + $0x40] sm:$0xff] (!%p238_p2)   ;;  %v1981_v2 = vld [vmem:[%s2485_s1 + $0x48] sm:$0xff] (!%p238_p2)   ;;  %p268_p3 = scmp.lt.s32.totalorder (!%p238_p2), %s1691_s25, 1  ;;  %v1983_v4 = vld [vmem:[%s2485_s1 + $0x50] sm:$0xff] (!%p238_p2)   ;;  %vm611_vm0 = vcmask (!%p238_p2), 261120   ;;  %vm615_vm1 = vcmask (!%p238_p2), 253952  }
   0x6   : > { %241 = sbr.rel (%p238_p2) target bundleno = 1079 (0x437), region = 48  ;;  %v1980_v1 = vld [vmem:[%s2485_s1] sm:$0xff] (!%p238_p2)   ;;  %1802 = vmatprep.subr.bf16.mxu0 (!%p238_p2), %v1979_v0  ;;  %v1982_v3 = vld [vmem:[%s2485_s1 + $0x8] sm:$0xff] (!%p238_p2)   ;;  %v1984_v5 = vld [vmem:[%s2485_s1 + $0x10] sm:$0xff] (!%p238_p2)   ;;  %s2093_s20 = smov (!%p238_p2), 32   ;;  %vm637_vm2 = vcmask (!%p238_p2), 523520  }
   0x7   : > { %1803 = vmatpush3.bf16.msra.mxu0 (!%p238_p2), %v1980_v1  ;;  %v1985_v6 = vld [vmem:[%s2485_s1 + $0x58] sm:$0xff] (!%p238_p2)   ;;  %v1987_v8 = vld [vmem:[%s2485_s1 + $0x60] sm:$0xff] (!%p238_p2)   ;;  %v1989_v10 = vld [vmem:[%s2485_s1 + $0x68] sm:$0xff] (!%p238_p2)   ;;  %s2094_s8 = smov (!%p238_p2), 64   ;;  %s2095_s19 = smov (!%p238_p2), 96   ;;  %vm663_vm3 = vcmask (!%p238_p2), 785920  }
   0x8   : > { %1804 = vmatprep.subr.bf16.mxu0 (!%p238_p2), %v1981_v2  ;;  %v1986_v7 = vld [vmem:[%s2485_s1 + $0x18] sm:$0xff] (!%p238_p2)   ;;  %v1988_v9 = vld [vmem:[%s2485_s1 + $0x20] sm:$0xff] (!%p238_p2)   ;;  %v1990_v12 = vld [vmem:[%s2485_s1 + $0x28] sm:$0xff] (!%p238_p2)   ;;  %vm689_vm4 = vcmask (!%p238_p2), 1048320   ;;  %vm641_vm5 = vcmask (!%p238_p2), 516352   ;;  %vm667_vm6 = vcmask (!%p238_p2), 778752  }
   0x9   : > { %v1991_v13 = vld [vmem:[%s2485_s1 + $0x70] sm:$0xff] (!%p238_p2)   ;;  %v1993_v15 = vld [vmem:[%s2485_s1 + $0x78] sm:$0xff] (!%p238_p2)   ;;  %v2218_v32 = vld [vmem:[%s2486_s2] ss:$0 sm:$0xff] (!%p238_p2)  ;;  %vm693_vm7 = vcmask (!%p238_p2), 1041152   ;;  %vm1113_vm8 = vcmask (!%p238_p2), 517120  }
   0xa   : > { %v1992_v14 = vld [vmem:[%s2485_s1 + $0x30] sm:$0xff] (!%p238_p2)   ;;  %v1994_v16 = vld [vmem:[%s2485_s1 + $0x38] sm:$0xff] (!%p238_p2)   ;;  %vm1119_vm9 = vcmask (!%p238_p2), 519170   ;;  %vm1126_vm10 = vcmask (!%p238_p2), 1041920   ;;  %vm1134_vm11 = vcmask (!%p238_p2), 1043970   ;;  %vm2097_vm12 = vmmov (!%p238_p2), 0  }
   0xb   : > { %1805 = vmatpush3.bf16.msra.mxu0 (!%p238_p2), %v1982_v3  ;;  %vm1512_vm13 = vcmask (!%p238_p2), 523264  }
   0xc   : > { %1806 = vmatprep.subr.bf16.mxu0 (!%p238_p2), %v1983_v4 }
   0xd   : > { %s2493_s25 = smov (!%p268_p3, %s1691_s25), 1 }
   0xe   : > { %s1965_s17 = smul.u32 104, %s2493_s25  ;;  %s1697_s22 = sshll.u32 %s2493_s25, 2 }
   0xf   : > { %1807 = vmatpush3.bf16.msra.mxu0 %v1984_v5  ;;  %s276_s27 = scalar_lea.vmem %s2491_s7, %s1697_s22 }
  0x10   : > { %1808 = vmatprep.subr.bf16.mxu0 %v1985_v6  ;;  %s2179_s26 = scalar_lea.vmem %s2484_s0, %s1965_s17 }
  0x11   : > { %v1997_v11 = vld [vmem:[%s2179_s26 + $0x4] ss:$8 sps:$4 sm:$0xff]   ;;  %v1995_v17 = vld [vmem:[%s2179_s26] ss:$8 sps:$4 sm:$0xff]   ;;  %v1998_v18 = vld [vmem:[%s2179_s26 + $0x14] ss:$8 sps:$4 sm:$0xff]  }
  0x12   : > { %525 = vmatprep.mubr.bf16.mxu0 %v1997_v11  ;;  %v2000_v19 = vld [vmem:[%s2179_s26 + $0x10] ss:$8 sps:$4 sm:$0xff]   ;;  %v2001_v20 = vld [vmem:[%s2179_s26 + $0x24] ss:$8 sps:$4 sm:$0xff]   ;;  %v2003_v21 = vld [vmem:[%s2179_s26 + $0x20] ss:$8 sps:$4 sm:$0xff]  }
  0x13   : > { %1809 = vmatpush3.bf16.msra.mxu0 %v1986_v7  ;;  %v2004_v22 = vld [vmem:[%s2179_s26 + $0x34] ss:$8 sps:$4 sm:$0xff]   ;;  %v2006_v23 = vld [vmem:[%s2179_s26 + $0x30] ss:$8 sps:$4 sm:$0xff]   ;;  %v2007_v24 = vld [vmem:[%s2179_s26 + $0x44] ss:$8 sps:$4 sm:$0xff]  }
  0x14   : > { %1810 = vmatprep.subr.bf16.mxu0 %v1987_v8  ;;  %v2009_v25 = vld [vmem:[%s2179_s26 + $0x40] ss:$8 sps:$4 sm:$0xff]   ;;  %v2010_v26 = vld [vmem:[%s2179_s26 + $0x54] ss:$8 sps:$4 sm:$0xff]   ;;  %v2012_v28 = vld [vmem:[%s2179_s26 + $0x50] ss:$8 sps:$4 sm:$0xff]  }
  0x15   : > { %v290_v27 = vld [vmem:[%s2179_s26 + $0x60] sm:$0x33] }
  0x16   : > { %v1712_v29 = vcombine.high %v290_v27, %v290_v27  ;;  %v1711_v30 = vcombine.low %v290_v27, %v290_v27 }
  0x17   : > { %1811 = vmatpush3.bf16.msra.mxu0 %v1988_v9 }
  0x18   : > { %1812 = vmatprep.subr.bf16.mxu0 %v1989_v10 }
  0x1b   : > { %1813 = vmatpush3.bf16.msra.mxu0 %v1990_v12 }
  0x1c   : > { %1814 = vmatprep.subr.bf16.mxu0 %v1991_v13 }
  0x1f   : > { %1815 = vmatpush3.bf16.msra.mxu0 %v1992_v14 }
  0x20   : > { %1816 = vmatprep.subr.bf16.mxu0 %v1993_v15 }
  0x23   : > { %1817 = vmatpush3.bf16.msra.mxu0 %v1994_v16 }
  0x26   : > { %526 = vmatmul.mubr.bf16.vlgmr.msra.gmra.mrb[0].mxu0 %v1995_v17 }
  0x27   : > { %533 = vmatprep.mubr.bf16.mxu0 %v1998_v18  ;;  %v2015_v18 = vld [vmem:[%s2487_s3 + $0x40] sm:$0xff]  }
  0x28   : > { %1860 = vmatprep.subr.bf16.mxu1 %v2015_v18 }
  0x2e   : > { %534 = vmatmul.mubr.bf16.gmra.mrb[4].mxu0 %v2000_v19  ;;  %v2016_v19 = vld [vmem:[%s2487_s3] sm:$0xff]  }
  0x2f   : > { %541 = vmatprep.mubr.bf16.mxu0 %v2001_v20  ;;  %1861 = vmatpush3.bf16.msra.mxu1 %v2016_v19 }
  0x36   : > { %542 = vmatmul.mubr.bf16.gmra.mrb[8].mxu0 %v2003_v21 }
  0x37   : > { %549 = vmatprep.mubr.bf16.mxu0 %v2004_v22 }
  0x3e   : > { %550 = vmatmul.mubr.bf16.gmra.mrb[12].mxu0 %v2006_v23 }
  0x3f   : > { %557 = vmatprep.mubr.bf16.mxu0 %v2007_v24 }
  0x46   : > { %558 = vmatmul.mubr.bf16.gmra.mrb[16].mxu0 %v2009_v25 }
  0x47   : > { %565 = vmatprep.mubr.bf16.mxu0 %v2010_v26  ;;  %v2017_v26 = vld [vmem:[%s2487_s3 + $0x48] sm:$0xff]  }
  0x48   : > { %1862 = vmatprep.subr.bf16.mxu1 %v2017_v26 }
  0x4e   : > { %566 = vmatmul.mubr.bf16.gmra.mrb[20].mxu0 %v2012_v28 }
  0x4f   : > { %573 = vmatprep.mubr.bf16.mxu0 %v1712_v29  ;;  %v2018_v29 = vld [vmem:[%s2487_s3 + $0x8] sm:$0xff]  }
  0x50   : > { %1863 = vmatpush3.bf16.msra.mxu1 %v2018_v29 }
  0x56   : > { %574 = vmatmul.mubr.bf16.gmra.mrb[24].mxu0 %v1711_v30 }
  0xf9   : > { %v1818_v31 = vpop.f32.mrb[0].mxu0 }
  0xfa   : > { %v1819_v33 = vpop.f32.mrb[1].mxu0 }
  0xfb   : > { %v1820_v34 = vadd.f32 %v1819_v33, %v1818_v31  ;;  %v1821_v35 = vpop.f32.mrb[2].mxu0 }
  0xfc   : > { %v1822_v36 = vpop.f32.mrb[3].mxu0 }
  0xfd   : > { %v528_v37 = vadd.f32 %v1820_v34, %v2218_v32  ;;  %v1823_v38 = vadd.f32 %v1822_v36, %v1821_v35 }
  0xff   : > { %v581_v39 = vmax.f32 %v528_v37, 0.0  ;;  %v531_v40 = vadd.f32 %v1823_v38, %v2218_v32  ;;  %v2019_v38 = vld [vmem:[%s2487_s3 + $0x50] sm:$0xff]  }
 0x100   : > { %1864 = vmatprep.subr.bf16.mxu1 %v2019_v38 }
 0x101   : > { %v582_v41 = vmax.f32 %v531_v40, 0.0  ;;  %v1824_v42 = vpop.f32.mrb[4].mxu0  ;;  %612 = vst.msk [vmem:[#allocation3] sm:$0xff] %vm611_vm0, %v581_v39 }
 0x102   : > { %v1825_v43 = vpop.f32.mrb[5].mxu0 }
 0x103   : > { %v1826_v44 = vadd.f32 %v1825_v43, %v1824_v42  ;;  %v1827_v45 = vpop.f32.mrb[6].mxu0  ;;  %613 = vst.msk [vmem:[#allocation3 + $0x8] sm:$0xff] %vm611_vm0, %v582_v41  ;;  %v2020_v41 = vld [vmem:[%s2487_s3 + $0x10] sm:$0xff]  }
 0x104   : > { %v1828_v46 = vpop.f32.mrb[7].mxu0  ;;  %1865 = vmatpush3.bf16.msra.mxu1 %v2020_v41 }
 0x105   : > { %v536_v47 = vadd.f32 %v1826_v44, %v2218_v32  ;;  %v1829_v48 = vadd.f32 %v1828_v46, %v1827_v45 }
 0x107   : > { %v583_v49 = vmax.f32 %v536_v47, 0.0  ;;  %v539_v50 = vadd.f32 %v1829_v48, %v2218_v32  ;;  %v2021_v47 = vld [vmem:[%s2487_s3 + $0x58] sm:$0xff]  }
 0x108   : > { %1866 = vmatprep.subr.bf16.mxu1 %v2021_v47 }
 0x109   : > { %v584_v51 = vmax.f32 %v539_v50, 0.0  ;;  %v1830_v52 = vpop.f32.mrb[8].mxu0  ;;  %614 = vst.msk [vmem:[#allocation3 + $0x10] sm:$0xff] %vm611_vm0, %v583_v49  ;;  %v2022_v49 = vld [vmem:[%s2487_s3 + $0x18] sm:$0xff]  }
 0x10a   : > { %v1831_v53 = vpop.f32.mrb[9].mxu0  ;;  %1867 = vmatpush3.bf16.msra.mxu1 %v2022_v49 }
 0x10b   : > { %597 = vst [vmem:[#allocation2 + $0x18] sm:$0xff] %v584_v51  ;;  %v1832_v54 = vadd.f32 %v1831_v53, %v1830_v52  ;;  %v1833_v55 = vpop.f32.mrb[10].mxu0  ;;  %v2023_v52 = vld [vmem:[%s2487_s3 + $0x60] sm:$0xff]  }
 0x10c   : > { %v1834_v56 = vpop.f32.mrb[11].mxu0  ;;  %v2024_v53 = vld [vmem:[%s2487_s3 + $0x20] sm:$0xff]   ;;  %1868 = vmatprep.subr.bf16.mxu1 %v2023_v52  ;;  %v2037_v52 = vld [vmem:[%s2487_s3 + $0xd8] sm:$0xff]  }
 0x10d   : > { %v544_v57 = vadd.f32 %v1832_v54, %v2218_v32  ;;  %v1835_v58 = vadd.f32 %v1834_v56, %v1833_v55  ;;  %v2025_v54 = vld [vmem:[%s2487_s3 + $0x68] sm:$0xff]  }
 0x10e   : > { %1869 = vmatpush3.bf16.msra.mxu1 %v2024_v53  ;;  %v2026_v55 = vld [vmem:[%s2487_s3 + $0x28] sm:$0xff]   ;;  %v2038_v53 = vld [vmem:[%s2487_s3 + $0x98] sm:$0xff]  }
 0x10f   : > { %v585_v59 = vmax.f32 %v544_v57, 0.0  ;;  %v547_v60 = vadd.f32 %v1835_v58, %v2218_v32  ;;  %1870 = vmatprep.subr.bf16.mxu1 %v2025_v54  ;;  %v2027_v58 = vld [vmem:[%s2487_s3 + $0x70] sm:$0xff]   ;;  %v2040_v54 = vld [vmem:[%s2487_s3 + $0xa0] sm:$0xff]  }
 0x111   : > { %598 = vst [vmem:[#allocation2 + $0x20] sm:$0xff] %v585_v59  ;;  %v586_v61 = vmax.f32 %v547_v60, 0.0  ;;  %v1836_v62 = vpop.f32.mrb[12].mxu0  ;;  %v2028_v59 = vld [vmem:[%s2487_s3 + $0x30] sm:$0xff]  }
 0x112   : > { %v1837_v63 = vpop.f32.mrb[13].mxu0  ;;  %v610_v0 = vld [vmem:[#allocation2 + $0x18] sm:$0x1]  ;;  %1871 = vmatpush3.bf16.msra.mxu1 %v2026_v55  ;;  %v2041_v55 = vld [vmem:[%s2487_s3 + $0xe8] sm:$0xff]  }
 0x113   : > { %599 = vst [vmem:[#allocation2 + $0x28] sm:$0xff] %v586_v61  ;;  %v1838_v1 = vadd.f32 %v1837_v63, %v1836_v62  ;;  %v1839_v2 = vpop.f32.mrb[14].mxu0  ;;  %616 = vst.msk [vmem:[#allocation3 + $0x18] sm:$0x1] %vm615_vm1, %v610_v0  ;;  %1872 = vmatprep.subr.bf16.mxu1 %v2027_v58  ;;  %v2029_v61 = vld [vmem:[%s2487_s3 + $0x78] sm:$0xff]   ;;  %v2031_v0 = vld [vmem:[%s2487_s3 + $0xc0] sm:$0xff]  }
 0x114   : > { %v1840_v3 = vpop.f32.mrb[15].mxu0  ;;  %v2030_v62 = vld [vmem:[%s2487_s3 + $0x38] sm:$0xff]   ;;  %v2044_v58 = vld [vmem:[%s2487_s3 + $0xb0] sm:$0xff]  }
 0x115   : > { %v552_v4 = vadd.f32 %v1838_v1, %v2218_v32  ;;  %v1841_v5 = vadd.f32 %v1840_v3, %v1839_v2 }
 0x116   : > { %1873 = vmatpush3.bf16.msra.mxu1 %v2028_v59  ;;  %v2045_v59 = vld [vmem:[%s2487_s3 + $0xf8] sm:$0xff]  }
 0x117   : > { %v587_v6 = vmax.f32 %v552_v4, 0.0  ;;  %v555_v7 = vadd.f32 %v1841_v5, %v2218_v32  ;;  %1874 = vmatprep.subr.bf16.mxu1 %v2029_v61 }
 0x118   : > { %v617_v8 = vld [vmem:[#allocation2 + $0x19] sm:$0xff] }
 0x119   : > { %600 = vst [vmem:[#allocation2 + $0x30] sm:$0xff] %v587_v6  ;;  %v588_v9 = vmax.f32 %v555_v7, 0.0  ;;  %v1842_v10 = vpop.f32.mrb[16].mxu0  ;;  %625 = vrot.lane.b32.xlu0 %v617_v8, %s2093_s20 }
 0x11a   : > { %v1843_v11 = vpop.f32.mrb[17].mxu0  ;;  %v618_v15 = vld [vmem:[#allocation2 + $0x21] sm:$0xff]  ;;  %1875 = vmatpush3.bf16.msra.mxu1 %v2030_v62 }
 0x11b   : > { %601 = vst [vmem:[#allocation2 + $0x38] sm:$0xff] %v588_v9  ;;  %v1844_v12 = vadd.f32 %v1843_v11, %v1842_v10  ;;  %v1845_v13 = vpop.f32.mrb[18].mxu0  ;;  %1882 = vmatprep.subr.bf16.mxu1 %v2031_v0  ;;  %v2047_v0 = vld [vmem:[%s2489_s5 + $0x40] sm:$0xff]  }
 0x11c   : > { %v1846_v14 = vpop.f32.mrb[19].mxu0  ;;  %1904 = vmatprep.subr.bf16.mxu0 %v2047_v0 }
 0x11d   : > { %v560_v16 = vadd.f32 %v1844_v12, %v2218_v32  ;;  %v1847_v17 = vadd.f32 %v1846_v14, %v1845_v13  ;;  %627 = vrot.lane.b32.xlu0 %v618_v15, %s2093_s20 }
 0x11f   : > { %v589_v20 = vmax.f32 %v560_v16, 0.0  ;;  %v563_v21 = vadd.f32 %v1847_v17, %v2218_v32 }
 0x120   : > { %v619_v22 = vld [vmem:[#allocation2 + $0x29] sm:$0xff]  ;;  %v620_v56 = vld [vmem:[#allocation2 + $0x31] sm:$0x1] }
 0x121   : > { %602 = vst [vmem:[#allocation2 + $0x40] sm:$0xff] %v589_v20  ;;  %v590_v23 = vmax.f32 %v563_v21, 0.0  ;;  %v1848_v24 = vpop.f32.mrb[20].mxu0  ;;  %629 = vrot.lane.b32.xlu1 %v619_v22, %s2093_s20 }
 0x122   : > { %v1849_v25 = vpop.f32.mrb[21].mxu0  ;;  %v643_v31 = vld [vmem:[#allocation2 + $0x32] sm:$0xff] }
 0x123   : > { %603 = vst [vmem:[#allocation2 + $0x48] sm:$0xff] %v590_v23  ;;  %v1850_v27 = vadd.f32 %v1849_v25, %v1848_v24  ;;  %v1851_v28 = vpop.f32.mrb[22].mxu0 }
 0x124   : > { %v1852_v30 = vpop.f32.mrb[23].mxu0 }
 0x125   : > { %v568_v33 = vadd.f32 %v1850_v27, %v2218_v32  ;;  %v1853_v34 = vadd.f32 %v1852_v30, %v1851_v28  ;;  %651 = vrot.lane.b32.xlu1 %v643_v31, %s2094_s8 }
 0x127   : > { %v591_v35 = vmax.f32 %v568_v33, 0.0  ;;  %v571_v36 = vadd.f32 %v1853_v34, %v2218_v32 }
 0x128   : > { %v644_v37 = vld [vmem:[#allocation2 + $0x3a] sm:$0xff] }
 0x129   : > { %604 = vst [vmem:[#allocation2 + $0x50] sm:$0xff] %v591_v35  ;;  %v592_v39 = vmax.f32 %v571_v36, 0.0  ;;  %v1854_v40 = vpop.f32.mrb[24].mxu0  ;;  %653 = vrot.lane.b32.xlu0 %v644_v37, %s2094_s8 }
 0x12a   : > { %v1855_v42 = vpop.f32.mrb[25].mxu0  ;;  %v645_v43 = vld [vmem:[#allocation2 + $0x42] sm:$0xff]  ;;  %v646_v63 = vld [vmem:[#allocation2 + $0x4a] sm:$0x1] }
 0x12b   : > { %605 = vst [vmem:[#allocation2 + $0x58] sm:$0xff] %v592_v39  ;;  %v1856_v44 = vadd.f32 %v1855_v42, %v1854_v40  ;;  %v1857_v45 = vpop.f32.mrb[26].mxu0  ;;  %655 = vrot.lane.b32.xlu1 %v645_v43, %s2094_s8 }
 0x12c   : > { %v1858_v46 = vpop.f32.mrb[27].mxu0  ;;  %v2033_v45 = vld [vmem:[%s2487_s3 + $0xc8] sm:$0xff]  }
 0x12d   : > { %v576_v48 = vadd.f32 %v1856_v44, %v2218_v32  ;;  %v2032_v44 = vld [vmem:[%s2487_s3 + $0x80] sm:$0xff]  }
 0x12f   : > { %v593_v50 = vmax.f32 %v576_v48, 0.0  ;;  %v2034_v48 = vld [vmem:[%s2487_s3 + $0x88] sm:$0xff]  }
 0x130   : > { %v669_v51 = vld [vmem:[#allocation2 + $0x4b] sm:$0xff] }
 0x131   : > { %606 = vst [vmem:[#allocation2 + $0x60] sm:$0xf] %v593_v50  ;;  %677 = vrot.lane.b32.xlu0 %v669_v51, %s2095_s19  ;;  %v2035_v50 = vld [vmem:[%s2487_s3 + $0xd0] sm:$0xff]  }
 0x132   : > { %v670_v32 = vld [vmem:[#allocation2 + $0x53] sm:$0xff] }
 0x133   : > { %679 = vrot.lane.b32.xlu1 %v670_v32, %s2095_s19  ;;  %v2036_v51 = vld [vmem:[%s2487_s3 + $0x90] sm:$0xff]   ;;  %v2039_v32 = vld [vmem:[%s2487_s3 + $0xe0] sm:$0xff]  }
 0x137   : > { %631 = vrot.lane.b32.xlu1 %v620_v56, %s2093_s20  ;;  %v2042_v56 = vld [vmem:[%s2487_s3 + $0xa8] sm:$0xff]  }
 0x138   : > { %v671_v57 = vld [vmem:[#allocation2 + $0x5b] sm:$0xff]  ;;  %v672_v60 = vld [vmem:[#allocation2 + $0x63] sm:$0x1] }
 0x139   : > { %681 = vrot.lane.b32.xlu0 %v671_v57, %s2095_s19  ;;  %v2043_v57 = vld [vmem:[%s2487_s3 + $0xf0] sm:$0xff]  }
 0x13b   : > { %683 = vrot.lane.b32.xlu1 %v672_v60, %s2095_s19  ;;  %v2046_v60 = vld [vmem:[%s2487_s3 + $0xb8] sm:$0xff]  }
 0x13d   : > { %657 = vrot.lane.b32.xlu0 %v646_v63, %s2094_s8 }
 0x18b   : > { %v626_v1 = vpop.permute.xlu0 %625 }
 0x18c   : > { %638 = vst.msk [vmem:[#allocation3] sm:$0xff] %vm637_vm2, %v626_v1  ;;  %v2048_v1 = vld [vmem:[%s2489_s5] sm:$0xff]  }
 0x18d   : > { %1905 = vmatpush3.bf16.msra.mxu0 %v2048_v1 }
 0x18f   : > { %v628_v2 = vpop.permute.xlu0 %627 }
 0x190   : > { %639 = vst.msk [vmem:[#allocation3 + $0x8] sm:$0xff] %vm637_vm2, %v628_v2  ;;  %v2049_v2 = vld [vmem:[%s2489_s5 + $0x48] sm:$0xff]  }
 0x191   : > { %1906 = vmatprep.subr.bf16.mxu0 %v2049_v2 }
 0x193   : > { %v630_v3 = vpop.permute.xlu1 %629 }
 0x194   : > { %640 = vst.msk [vmem:[#allocation3 + $0x10] sm:$0xff] %vm637_vm2, %v630_v3  ;;  %v2050_v3 = vld [vmem:[%s2489_s5 + $0x8] sm:$0xff]  }
 0x195   : > { %1907 = vmatpush3.bf16.msra.mxu0 %v2050_v3  ;;  %v2074_v3 = vld [vmem:[%s2489_s5 + $0xa8] sm:$0xff]  }
 0x197   : > { %v652_v4 = vpop.permute.xlu1 %651 }
 0x198   : > { %664 = vst.msk [vmem:[#allocation3] sm:$0xff] %vm663_vm3, %v652_v4  ;;  %v2057_v4 = vld [vmem:[%s2489_s5 + $0xc0] sm:$0xff]  }
 0x19b   : > { %v654_v5 = vpop.permute.xlu0 %653 }
 0x19c   : > { %665 = vst.msk [vmem:[#allocation3 + $0x8] sm:$0xff] %vm663_vm3, %v654_v5  ;;  %v2058_v5 = vld [vmem:[%s2489_s5 + $0x80] sm:$0xff]  }
 0x19d   : > { %v656_v6 = vpop.permute.xlu1 %655 }
 0x19e   : > { %666 = vst.msk [vmem:[#allocation3 + $0x10] sm:$0xff] %vm663_vm3, %v656_v6  ;;  %v2051_v6 = vld [vmem:[%s2489_s5 + $0x50] sm:$0xff]  }
 0x19f   : > { %1908 = vmatprep.subr.bf16.mxu0 %v2051_v6  ;;  %v2076_v6 = vld [vmem:[%s2489_s5 + $0xf0] sm:$0xff]  }
 0x1a3   : > { %v678_v7 = vpop.permute.xlu0 %677 }
 0x1a4   : > { %690 = vst.msk [vmem:[#allocation3] sm:$0xff] %vm689_vm4, %v678_v7  ;;  %v2061_v7 = vld [vmem:[%s2489_s5 + $0xc8] sm:$0xff]  }
 0x1a5   : > { %v680_v8 = vpop.permute.xlu1 %679 }
 0x1a6   : > { %691 = vst.msk [vmem:[#allocation3 + $0x8] sm:$0xff] %vm689_vm4, %v680_v8  ;;  %v2052_v8 = vld [vmem:[%s2489_s5 + $0x10] sm:$0xff]  }
 0x1a7   : > { %1909 = vmatpush3.bf16.msra.mxu0 %v2052_v8  ;;  %v2096_v8 = vmov 0.0  }
 0x1a9   : > { %v632_v9 = vpop.permute.xlu1 %631 }
 0x1aa   : > { %642 = vst.msk [vmem:[#allocation3 + $0x18] sm:$0x1] %vm641_vm5, %v632_v9  ;;  %v2053_v9 = vld [vmem:[%s2489_s5 + $0x58] sm:$0xff]  }
 0x1ab   : > { %v695_v10 = vld [vmem:[#allocation3] sm:$0xf]  ;;  %v682_v11 = vpop.permute.xlu0 %681  ;;  %1910 = vmatprep.subr.bf16.mxu0 %v2053_v9 }
 0x1ac   : > { %v709_v12 = vld [vmem:[#allocation3 + $0x1] sm:$0xf]  ;;  %696 = vst [vmem:[#allocation4] sm:$0xf] %v695_v10  ;;  %692 = vst.msk [vmem:[#allocation3 + $0x10] sm:$0xff] %vm689_vm4, %v682_v11  ;;  %v2054_v10 = vld [vmem:[%s2489_s5 + $0x18] sm:$0xff]  }
 0x1ad   : > { %710 = vst [vmem:[#allocation4 + $0x8] sm:$0xf] %v709_v12  ;;  %v697_v13 = vld [vmem:[#allocation3 + $0x5] sm:$0xf]  ;;  %v702_v14 = vld [vmem:[#allocation3 + $0xa] sm:$0xf]  ;;  %v684_v24 = vpop.permute.xlu1 %683  ;;  %1911 = vmatpush3.bf16.msra.mxu0 %v2054_v10 }
 0x1ae   : > { %v723_v15 = vld [vmem:[#allocation3 + $0x5] sm:$0xf]  ;;  %v699_v16 = vrot.slane %v697_v13, 4  ;;  %703 = vst [vmem:[#allocation4 + $0x20] sm:$0xf] %v702_v14  ;;  %v2055_v11 = vld [vmem:[%s2489_s5 + $0x60] sm:$0xff]  }
 0x1af   : > { %724 = vst [vmem:[#allocation4 + $0x10] sm:$0xf] %v723_v15  ;;  %v725_v17 = vld [vmem:[#allocation3 + $0xa] sm:$0xf]  ;;  %v737_v18 = vld [vmem:[#allocation3 + $0x6] sm:$0xf]  ;;  %v658_v21 = vpop.permute.xlu0 %657  ;;  %1912 = vmatprep.subr.bf16.mxu0 %v2055_v11 }
 0x1b0   : > { %v727_v19 = vrot.slane %v725_v17, 4  ;;  %738 = vst [vmem:[#allocation4 + $0x18] sm:$0xf] %v737_v18  ;;  %v739_v20 = vld [vmem:[#allocation3 + $0xb] sm:$0xf]  ;;  %v2056_v12 = vld [vmem:[%s2489_s5 + $0x20] sm:$0xff]  }
 0x1b1   : > { %v711_v22 = vld [vmem:[#allocation3 + $0x6] sm:$0xf]  ;;  %701 = vst [vmem:[#allocation4] sm:$0xf0] %v699_v16  ;;  %v741_v23 = vrot.slane %v739_v20, 4  ;;  %1913 = vmatpush3.bf16.msra.mxu0 %v2056_v12  ;;  %v2079_v11 = vld [vmem:[%s2489_s5 + $0xf8] sm:$0xff]  }
 0x1b2   : > { %668 = vst.msk [vmem:[#allocation3 + $0x18] sm:$0x1] %vm667_vm6, %v658_v21  ;;  %v713_v25 = vrot.slane %v711_v22, 4  ;;  %v716_v26 = vld [vmem:[#allocation3 + $0xb] sm:$0xf]  ;;  %v2059_v13 = vld [vmem:[%s2489_s5 + $0x68] sm:$0xff]  }
 0x1b3   : > { %729 = vst [vmem:[#allocation4 + $0x10] sm:$0xf0] %v727_v19  ;;  %694 = vst.msk [vmem:[#allocation3 + $0x18] sm:$0x1] %vm693_vm7, %v684_v24  ;;  %v704_v27 = vld [vmem:[#allocation3 + $0xf] sm:$0xf]  ;;  %1914 = vmatprep.subr.bf16.mxu0 %v2059_v13 }
 0x1b4   : > { %717 = vst [vmem:[#allocation4 + $0x28] sm:$0xf] %v716_v26  ;;  %743 = vst [vmem:[#allocation4 + $0x18] sm:$0xf0] %v741_v23  ;;  %v730_v28 = vld [vmem:[#allocation3 + $0xf] sm:$0xf] }
 0x1b5   : > { %715 = vst [vmem:[#allocation4 + $0x8] sm:$0xf0] %v713_v25  ;;  %v732_v29 = vld [vmem:[#allocation3 + $0x14] sm:$0xf]  ;;  %v706_v30 = vrot.slane %v704_v27, 4  ;;  %v2060_v14 = vld [vmem:[%s2489_s5 + $0x28] sm:$0xff]  }
 0x1b6   : > { %731 = vst [vmem:[#allocation4 + $0x30] sm:$0xf] %v730_v28  ;;  %v734_v31 = vrot.slane %v732_v29, 4  ;;  %v744_v33 = vld [vmem:[#allocation3 + $0x10] sm:$0xf]  ;;  %1915 = vmatpush3.bf16.msra.mxu0 %v2060_v14  ;;  %v2062_v27 = vld [vmem:[%s2489_s5 + $0x88] sm:$0xff]  }
 0x1b7   : > { %v718_v34 = vld [vmem:[#allocation3 + $0x10] sm:$0xf]  ;;  %745 = vst [vmem:[#allocation4 + $0x38] sm:$0xf] %v744_v33  ;;  %708 = vst [vmem:[#allocation4 + $0x20] sm:$0xf0] %v706_v30 }
 0x1b8   : > { %v720_v35 = vrot.slane %v718_v34, 4  ;;  %736 = vst [vmem:[#allocation4 + $0x30] sm:$0xf0] %v734_v31  ;;  %v751_v38 = vld [vmem:[#allocation4] sm:$0xff]  ;;  %v1729_v21 = vld [vmem:[%s2488_s4] ss:$0 sm:$0xff] }
 0x1b9   : > { %v2063_v33 = vld [vmem:[%s2489_s5 + $0xd0] sm:$0xff]   ;;  %v2081_v14 = vld [vmem:[%s2489_s5 + $0xb8] sm:$0xff]  }
 0x1ba   : > { %722 = vst [vmem:[#allocation4 + $0x28] sm:$0xf0] %v720_v35  ;;  %v746_v36 = vld [vmem:[#allocation3 + $0x15] sm:$0xf]  ;;  %v2078_v10 = vld [vmem:[%s2489_s5 + $0xb0] sm:$0xff]  }
 0x1bb   : > { %v748_v37 = vrot.slane %v746_v36, 4  ;;  %v754_v46 = vld [vmem:[#allocation4 + $0x18] sm:$0xff]  ;;  %v753_v62 = vld [vmem:[#allocation4 + $0x10] sm:$0xff]  ;;  %v2064_v36 = vld [vmem:[%s2489_s5 + $0x70] sm:$0xff]  }
 0x1bc   : > { %v752_v40 = vld [vmem:[#allocation4 + $0x8] sm:$0xff]  ;;  %1916 = vmatprep.subr.bf16.mxu0 %v2064_v36 }
 0x1bd   : > { %750 = vst [vmem:[#allocation4 + $0x38] sm:$0xf0] %v748_v37  ;;  %v2065_v37 = vld [vmem:[%s2489_s5 + $0x90] sm:$0xff]  }
 0x1be   : > { %v755_v39 = vld [vmem:[#allocation4 + $0x20] sm:$0xff] }
 0x1bf   : > { %v759_v42 = vpack.c.bf16 %v755_v39, %v751_v38  ;;  %v757_v61 = vld [vmem:[#allocation4 + $0x30] sm:$0xff]  ;;  %v2066_v38 = vld [vmem:[%s2489_s5 + $0x30] sm:$0xff]  }
 0x1c0   : > { %v761_v63 = vpack.c.bf16 %v757_v61, %v753_v62  ;;  %1917 = vmatpush3.bf16.msra.mxu0 %v2066_v38 }
 0x1c1   : > { %v756_v41 = vld [vmem:[#allocation4 + $0x28] sm:$0xff] }
 0x1c2   : > { %v760_v43 = vpack.c.bf16 %v756_v41, %v752_v40  ;;  %v2067_v40 = vld [vmem:[%s2489_s5 + $0xd8] sm:$0xff]  }
 0x1c3   : > { %v2068_v41 = vld [vmem:[%s2489_s5 + $0x98] sm:$0xff]  }
 0x1c4   : > { %1058 = vmatprep.mubr.bf16.mxu1 %v760_v43  ;;  %v758_v47 = vld [vmem:[#allocation4 + $0x38] sm:$0xff] }
 0x1c5   : > { %1059 = vmatmul.mubr.bf16.vlgmr.msra.gmra.mrb[0].mxu1 %v759_v42  ;;  %v762_v49 = vpack.c.bf16 %v758_v47, %v754_v46  ;;  %v2069_v42 = vld [vmem:[%s2489_s5 + $0x78] sm:$0xff]   ;;  %v2070_v43 = vld [vmem:[%s2489_s5 + $0xe0] sm:$0xff]  }
 0x1c6   : > { %1883 = vmatpush3.bf16.msra.mxu1 %v2032_v44  ;;  %1918 = vmatprep.subr.bf16.mxu0 %v2069_v42 }
 0x1c7   : > { %1884 = vmatprep.subr.bf16.mxu1 %v2033_v45  ;;  %1099 = vmatprep.mubr.bf16.mxu1 %v762_v49 }
 0x1ca   : > { %1885 = vmatpush3.bf16.msra.mxu1 %v2034_v48  ;;  %v2071_v48 = vld [vmem:[%s2489_s5 + $0x38] sm:$0xff]  }
 0x1cb   : > { %1886 = vmatprep.subr.bf16.mxu1 %v2035_v50  ;;  %1919 = vmatpush3.bf16.msra.mxu0 %v2071_v48 }
 0x1cc   : > { %1953 = vmatprep.subr.bf16.mxu0 %v2096_v8 }
 0x1ce   : > { %1887 = vmatpush3.bf16.msra.mxu1 %v2036_v51 }
 0x1cf   : > { %1888 = vmatprep.subr.bf16.mxu1 %v2037_v52 }
 0x1d2   : > { %1889 = vmatpush3.bf16.msra.mxu1 %v2038_v53 }
 0x1d3   : > { %1890 = vmatprep.subr.bf16.mxu1 %v2039_v32 }
 0x1d6   : > { %1891 = vmatpush3.bf16.msra.mxu1 %v2040_v54 }
 0x1d7   : > { %1892 = vmatprep.subr.bf16.mxu1 %v2041_v55  ;;  %v2072_v55 = vld [vmem:[%s2489_s5 + $0xa0] sm:$0xff]  }
 0x1da   : > { %1893 = vmatpush3.bf16.msra.mxu1 %v2042_v56 }
 0x1db   : > { %1894 = vmatprep.subr.bf16.mxu1 %v2043_v57 }
 0x1de   : > { %1895 = vmatpush3.bf16.msra.mxu1 %v2044_v58 }
 0x1df   : > { %1896 = vmatprep.subr.bf16.mxu1 %v2045_v59 }
 0x1e2   : > { %1897 = vmatpush3.bf16.msra.mxu1 %v2046_v60 }
 0x1e3   : > { %1926 = vmatprep.subr.bf16.mxu1 %v2057_v4 }
 0x1e5   : > { %1100 = vmatmul.mubr.bf16.vlgmr.msra.gmra.mrb[4].mxu1 %v761_v63  ;;  %v2073_v63 = vld [vmem:[%s2489_s5 + $0xe8] sm:$0xff]  }
 0x1e6   : > { %1927 = vmatpush3.bf16.msra.mxu1 %v2058_v5 }
 0x1e7   : > { %1928 = vmatprep.subr.bf16.mxu1 %v2061_v7 }
 0x1ea   : > { %1929 = vmatpush3.bf16.msra.mxu1 %v2062_v27 }
 0x1eb   : > { %1930 = vmatprep.subr.bf16.mxu1 %v2063_v33  ;;  %v2083_v33 = vld [vmem:[%s2489_s5 + $0x110] sm:$0xff]  }
 0x1ee   : > { %1931 = vmatpush3.bf16.msra.mxu1 %v2065_v37 }
 0x1ef   : > { %1932 = vmatprep.subr.bf16.mxu1 %v2067_v40 }
 0x1f2   : > { %1933 = vmatpush3.bf16.msra.mxu1 %v2068_v41 }
 0x1f3   : > { %1934 = vmatprep.subr.bf16.mxu1 %v2070_v43  ;;  %v1762_v43 = vld [vmem:[%s2490_s6] ss:$0 sm:$0xff] }
 0x1f6   : > { %1935 = vmatpush3.bf16.msra.mxu1 %v2072_v55 }
 0x1f7   : > { %1936 = vmatprep.subr.bf16.mxu1 %v2073_v63 }
 0x1fa   : > { %1937 = vmatpush3.bf16.msra.mxu1 %v2074_v3 }
 0x1fb   : > { %1938 = vmatprep.subr.bf16.mxu1 %v2076_v6 }
 0x1fe   : > { %1939 = vmatpush3.bf16.msra.mxu1 %v2078_v10 }
 0x1ff   : > { %1940 = vmatprep.subr.bf16.mxu1 %v2079_v11 }
 0x202   : > { %1941 = vmatpush3.bf16.msra.mxu1 %v2081_v14 }
 0x298   : > { %v1876_v15 = vpop.f32.mrb[0].mxu1 }
 0x299   : > { %v1877_v16 = vpop.f32.mrb[1].mxu1 }
 0x29a   : > { %v1878_v17 = vadd.f32 %v1877_v16, %v1876_v15  ;;  %v1879_v18 = vpop.f32.mrb[2].mxu1 }
 0x29b   : > { %v1880_v19 = vpop.f32.mrb[3].mxu1 }
 0x29c   : > { %v1881_v20 = vadd.f32 %v1880_v19, %v1879_v18  ;;  %v1061_v24 = vadd.f32 %v1878_v17, %v1729_v21 }
 0x29e   : > { %v1064_v29 = vadd.f32 %v1881_v20, %v1729_v21 }
 0x2b8   : > { %v1898_v22 = vpop.f32.mrb[4].mxu1 }
 0x2b9   : > { %v1899_v23 = vpop.f32.mrb[5].mxu1 }
 0x2ba   : > { %v1900_v25 = vadd.f32 %v1899_v23, %v1898_v22  ;;  %v1901_v26 = vpop.f32.mrb[6].mxu1 }
 0x2bb   : > { %v1902_v28 = vpop.f32.mrb[7].mxu1 }
 0x2bc   : > { %v1102_v30 = vadd.f32 %v1900_v25, %v1061_v24  ;;  %v1903_v31 = vadd.f32 %v1902_v28, %v1901_v26  ;;  %v2077_v26 = vld [vmem:[%s2489_s5 + $0x100] sm:$0xff]   ;;  %v2080_v28 = vld [vmem:[%s2489_s5 + $0x108] sm:$0xff]  }
 0x2be   : > { %v1108_v34 = vmax.f32 %v1102_v30, 0.0  ;;  %v1105_v35 = vadd.f32 %v1903_v31, %v1064_v29 }
 0x2c0   : > { %1110 = vst [vmem:[#allocation5] sm:$0xff] %v1108_v34  ;;  %v1109_v39 = vmax.f32 %v1105_v35, 0.0  ;;  %v2084_v35 = vld [vmem:[%s2489_s5 + $0x118] sm:$0xff]  }
 0x2c2   : > { %1111 = vst [vmem:[#allocation5 + $0x8] sm:$0xff] %v1109_v39 }
 0x2c7   : > { %v1121_v44 = vld [vmem:[#allocation5 + $0x1] sm:$0x3]  ;;  %v1128_v45 = vld [vmem:[#allocation5 + $0x5] sm:$0x3] }
 0x2c8   : > { %1123 = vrot.lane.b32.xlu0 %v1121_v44, %s2094_s8  ;;  %v1130_v46 = vrot.slane %v1128_v45, 6  ;;  %v1112_v47 = vld [vmem:[#allocation5] sm:$0x3]  ;;  %v1143_v50 = vld [vmem:[#allocation5 + $0x4] sm:$0x3] }
 0x2c9   : > { %v1149_v49 = vld [vmem:[#allocation5 + $0x8] sm:$0x3]  ;;  %1114 = vst.msk [vmem:[#allocation6] sm:$0x3] %vm1113_vm8, %v1112_v47  ;;  %v1196_v51 = vld [vmem:[#allocation5 + $0xa] sm:$0x3] }
 0x2ca   : > { %1131 = vrot.lane.b32.xlu1 %v1130_v46, %s2094_s8  ;;  %v1151_v52 = vrot.slane %v1149_v49, 6  ;;  %v1169_v53 = vld [vmem:[#allocation5 + $0xa] sm:$0x3]  ;;  %1197 = vst.msk [vmem:[#allocation6 + $0x10] sm:$0x3] %vm1113_vm8, %v1196_v51 }
 0x2cb   : > { %v1198_v32 = vld [vmem:[#allocation5 + $0xe] sm:$0x3]  ;;  %v1115_v54 = vld [vmem:[#allocation5 + $0x4] sm:$0x3]  ;;  %v1136_v58 = vld [vmem:[#allocation5 + $0x2] sm:$0x3] }
 0x2cc   : > { %1145 = vrot.lane.b32.xlu0 %v1143_v50, %s2094_s8  ;;  %v1200_v56 = vrot.slane %v1198_v32, 6  ;;  %v1117_v57 = vrot.slane %v1115_v54, 6  ;;  %v1138_v59 = vld [vmem:[#allocation5 + $0x6] sm:$0x3]  ;;  %1137 = vst.msk [vmem:[#allocation6 + $0x4] sm:$0x3] %vm1113_vm8, %v1136_v58 }
 0x2cd   : > { %v1140_v60 = vrot.slane %v1138_v59, 6  ;;  %v1156_v61 = vld [vmem:[#allocation5 + $0x5] sm:$0x3]  ;;  %v1158_v62 = vld [vmem:[#allocation5 + $0x9] sm:$0x3]  ;;  %v1171_v7 = vrot.slane %v1169_v53, 6 }
 0x2ce   : > { %1152 = vrot.lane.b32.xlu1 %v1151_v52, %s2094_s8  ;;  %1202 = vst.msk [vmem:[#allocation6 + $0x10] sm:$0xc] %vm1119_vm9, %v1200_v56  ;;  %1120 = vst.msk [vmem:[#allocation6] sm:$0xc] %vm1119_vm9, %v1117_v57  ;;  %v1160_v0 = vrot.slane %v1158_v62, 6 }
 0x2cf   : > { %1157 = vst.msk [vmem:[#allocation6 + $0x8] sm:$0x3] %vm1113_vm8, %v1156_v61  ;;  %v1176_v1 = vld [vmem:[#allocation5 + $0x8] sm:$0x3]  ;;  %v1178_v2 = vld [vmem:[#allocation5 + $0xc] sm:$0x3] }
 0x2d0   : > { %v1163_v4 = vld [vmem:[#allocation5 + $0x6] sm:$0x3]  ;;  %1142 = vst.msk [vmem:[#allocation6 + $0x4] sm:$0xc] %vm1119_vm9, %v1140_v60  ;;  %v1180_v5 = vrot.slane %v1178_v2, 6 }
 0x2d1   : > { %1177 = vst.msk [vmem:[#allocation6 + $0xc] sm:$0x3] %vm1113_vm8, %v1176_v1  ;;  %1165 = vrot.lane.b32.xlu0 %v1163_v4, %s2094_s8  ;;  %v1189_v9 = vld [vmem:[#allocation5 + $0xd] sm:$0x3]  ;;  %v1183_v12 = vld [vmem:[#allocation5 + $0x9] sm:$0x3] }
 0x2d2   : > { %1162 = vst.msk [vmem:[#allocation6 + $0x8] sm:$0xc] %vm1119_vm9, %v1160_v0  ;;  %1182 = vst.msk [vmem:[#allocation6 + $0xc] sm:$0xc] %vm1119_vm9, %v1180_v5  ;;  %1172 = vrot.lane.b32.xlu1 %v1171_v7, %s2094_s8  ;;  %v1191_v13 = vrot.slane %v1189_v9, 6 }
 0x2d5   : > { %1185 = vrot.lane.b32.xlu0 %v1183_v12, %s2094_s8  ;;  %v1205_v36 = vld [vmem:[#allocation6 + $0x10] sm:$0xf] }
 0x2d6   : > { %1192 = vrot.lane.b32.xlu1 %v1191_v13, %s2094_s8  ;;  %v1216_v37 = vpack.c.bf16 %v1205_v36, %v1205_v36 }
 0x33a   : > { %v1124_v15 = vpop.permute.xlu0 %1123 }
 0x33b   : > { %1127 = vst.msk [vmem:[#allocation6] sm:$0x3] %vm1126_vm10, %v1124_v15 }
 0x33c   : > { %v1132_v16 = vpop.permute.xlu1 %1131 }
 0x33d   : > { %1135 = vst.msk [vmem:[#allocation6] sm:$0xc] %vm1134_vm11, %v1132_v16 }
 0x33e   : > { %v1146_v17 = vpop.permute.xlu0 %1145 }
 0x33f   : > { %1148 = vst.msk [vmem:[#allocation6 + $0x4] sm:$0x3] %vm1126_vm10, %v1146_v17 }
 0x340   : > { %v1153_v18 = vpop.permute.xlu1 %1152 }
 0x341   : > { %1155 = vst.msk [vmem:[#allocation6 + $0x4] sm:$0xc] %vm1134_vm11, %v1153_v18 }
 0x343   : > { %v1166_v19 = vpop.permute.xlu0 %1165 }
 0x344   : > { %1168 = vst.msk [vmem:[#allocation6 + $0x8] sm:$0x3] %vm1126_vm10, %v1166_v19  ;;  %v1173_v20 = vpop.permute.xlu1 %1172 }
 0x345   : > { %1175 = vst.msk [vmem:[#allocation6 + $0x8] sm:$0xc] %vm1134_vm11, %v1173_v20 }
 0x347   : > { %v1186_v21 = vpop.permute.xlu0 %1185 }
 0x348   : > { %1188 = vst.msk [vmem:[#allocation6 + $0xc] sm:$0x3] %vm1126_vm10, %v1186_v21  ;;  %v1193_v22 = vpop.permute.xlu1 %1192  ;;  %v1203_v23 = vld [vmem:[#allocation6] sm:$0xff] }
 0x349   : > { %1195 = vst.msk [vmem:[#allocation6 + $0xc] sm:$0xc] %vm1134_vm11, %v1193_v22  ;;  %v1208_v24 = vcombine.high %v1203_v23, %v1203_v23  ;;  %v1212_v27 = vpack.c.bf16 %v1203_v23, %v1203_v23 }
 0x34b   : > { %v1213_v25 = vpack.c.bf16 %v1208_v24, %v1208_v24 }
 0x34d   : > { %1548 = vmatprep.mubr.bf16.mxu0 %v1213_v25 }
 0x34e   : > { %1549 = vmatmul.mubr.bf16.vlgmr.msra.gmra.mrb[28].mxu0 %v1212_v27 }
 0x34f   : > { %1954 = vmatpush3.bf16.msra.mxu0 %v2077_v26  ;;  %1961 = vmatprep.mubr.msk.bf16.mxu0 %vm2097_vm12, %v2096_v8 }
 0x350   : > { %1955 = vmatprep.subr.bf16.mxu0 %v2096_v8  ;;  %v1204_v29 = vld [vmem:[#allocation6 + $0x8] sm:$0xff] }
 0x351   : > { %v1209_v30 = vcombine.high %v1204_v29, %v1204_v29  ;;  %v1214_v34 = vpack.c.bf16 %v1204_v29, %v1204_v29 }
 0x353   : > { %1956 = vmatpush3.bf16.msra.mxu0 %v2080_v28  ;;  %v1215_v31 = vpack.c.bf16 %v1209_v30, %v1209_v30 }
 0x354   : > { %1957 = vmatprep.subr.bf16.mxu0 %v2096_v8 }
 0x355   : > { %1588 = vmatprep.mubr.bf16.mxu1 %v1215_v31 }
 0x356   : > { %1589 = vmatmul.mubr.bf16.vlgmr.msra.gmra.mrb[8].mxu1 %v1214_v34 }
 0x357   : > { %1958 = vmatpush3.bf16.msra.mxu0 %v2083_v33 }
 0x358   : > { %1959 = vmatprep.subr.bf16.mxu0 %v2096_v8 }
 0x35b   : > { %1960 = vmatpush3.bf16.msra.mxu0 %v2084_v35 }
 0x35e   : > { %1962 = vmatmul.mubr.msk.bf16.vlgmr.msra.gmra.mrb[32].mxu0 %vm1512_vm13, %v1216_v37 }
 0x421   : > { %v1920_v38 = vpop.f32.mrb[28].mxu0 }
 0x422   : > { %v1921_v39 = vpop.f32.mrb[29].mxu0 }
 0x423   : > { %v1922_v40 = vadd.f32 %v1921_v39, %v1920_v38  ;;  %v1923_v41 = vpop.f32.mrb[30].mxu0 }
 0x424   : > { %v1924_v42 = vpop.f32.mrb[31].mxu0 }
 0x425   : > { %v1551_v46 = vadd.f32 %v1922_v40, %v1762_v43 }
 0x429   : > { %v1942_v44 = vpop.f32.mrb[8].mxu1 }
 0x42a   : > { %v1943_v45 = vpop.f32.mrb[9].mxu1 }
 0x42b   : > { %v1944_v47 = vadd.f32 %v1943_v45, %v1942_v44  ;;  %v1945_v48 = vpop.f32.mrb[10].mxu1 }
 0x42c   : > { %v1946_v49 = vpop.f32.mrb[11].mxu1 }
 0x42d   : > { %v1591_v50 = vadd.f32 %v1944_v47, %v1551_v46 }
 0x431   : > { %v1630_v51 = vpop.f32.mrb[32].mxu0 }
 0x432   : > { %v1631_v52 = vadd.f32 %v1630_v51, %v1591_v50  ;;  %v1963_v53 = vpop.f32.mrb[33].mxu0 }
 0x433   : > { %v1633_v32 = vpop.f32.mrb[34].mxu0 }
 0x434   : > { %v1636_v54 = vmax.f32 %v1631_v52, 0.0  ;;  %v1964_v55 = vpop.f32.mrb[35].mxu0 }
 0x436   : > { %1637 = vst [vmem:[%s276_s27] sm:$0xf] %v1636_v54 }
 0x437 PF: > { %s17_s24 = sadd.s32 1, %s2091_s24  }
 0x438   : > { %p14_p4 = scmp.ge.s32.totalorder %s17_s24, 4  }
 0x43a   :  { %16 = sbr.rel (!%p14_p4) target bundleno = 1 (0x1), region = 78 }

</bundles_post_ra>
